<compile_context>
chip_gen: v7x
topology: tpu7x:2x2x1
jax: 0.10.0
libtpu: 0.0.40
codegen_flags: <defaults>
</compile_context>

<pallas_src>
import functools

import jax
import jax.numpy as jnp
from jax.experimental import pallas as pl
from jax.experimental.pallas import tpu as pltpu


LANE = 128


def _round_up(x, m):
    return ((x + m - 1) // m) * m


def _pad2(a, rows, cols):
    pr, pc = rows - a.shape[0], cols - a.shape[1]
    if pr == 0 and pc == 0:
        return a
    return jnp.pad(a, ((0, pr), (0, pc)))


# ----------------------------------------------------------------------------
# Fused GCN-block kernel (one grid step = one graph of the batch):
#   o = adj @ relu(adj @ (x @ W1) + b1) @ W2 + b2 + x @ Wr + br
# All matmul operands may be bf16 (compute dtype); accumulation, bias adds and
# the ReLU stay f32 via preferred_element_type / f32 biases.
# ----------------------------------------------------------------------------
def _gcn_block_kernel(adj_ref, x_ref, w1_ref, b1_ref, w2_ref, b2_ref,
                      wr_ref, br_ref, o_ref):
    adj = adj_ref[...]                      # (Np, Np)   compute dtype
    x = x_ref[...]                          # (Np, Fin)  compute dtype
    cdt = adj.dtype

    # gc1: support1 = x @ W1 ; h1 = relu(adj @ support1 + b1)   -- h1 stays in VMEM
    s1 = jnp.dot(x, w1_ref[...], preferred_element_type=jnp.float32)
    h1 = jnp.maximum(
        jnp.dot(adj, s1.astype(cdt), preferred_element_type=jnp.float32)
        + b1_ref[...], 0.0)                 # (Np, Hp) f32, lane-dense (Hp = 128k)

    # gc2 + fused fc1 residual
    s2 = jnp.dot(h1.astype(cdt), w2_ref[...], preferred_element_type=jnp.float32)
    out = (jnp.dot(adj, s2.astype(cdt), preferred_element_type=jnp.float32)
           + b2_ref[...]
           + jnp.dot(x, wr_ref[...], preferred_element_type=jnp.float32)
           + br_ref[...])                   # (Np, Cp) f32, lane-dense

    o_ref[...] = out.astype(o_ref.dtype)


def gcn_block_batched(adjs, xs, kp, *, shared_adj):
    """One fused pallas_call for a batch of graphs (grid = (B,), 'parallel').

    adjs: (N, N) array if shared_adj else list of B (N_b, N_b) arrays.
    xs:   list of B (N_b, Fin) feature matrices.
    Returns (B, Np, Cp) f32 node embeddings (rows >= N_b and cols >= nclass
    are padding and must be sliced off by the caller).
    """
    B = len(xs)
    Fin = xs[0].shape[1]
    Ns = [int(x.shape[0]) for x in xs]
    Np = max(_round_up(n, LANE) for n in Ns)

    # Whole-graph-resident kernel: adj (Np, Np) lives fully in VMEM.
    # TODO(synk): stream adj in (tile, tile) blocks with a K-reduction grid
    #             (and a persistent x@W support scratch) once Np > ~2048.
    assert Np <= 2048, "graph too large for the whole-graph-resident kernel"

    Hp = kp["w1"].shape[1]            # padded nhid  (multiple of 128)
    Cp = kp["w2"].shape[1]            # padded nclass (multiple of 128)
    cdt = kp["w1"].dtype              # compute dtype (f32 default, bf16 opt-in)
    itemsize = jnp.dtype(cdt).itemsize

    x_st = jnp.stack([_pad2(x, Np, Fin) for x in xs]).astype(cdt)   # (B, Np, Fin)
    if shared_adj:
        adj_st = _pad2(adjs, Np, Np)[None].astype(cdt)               # (1, Np, Np)
        adj_map = lambda b: (0, 0, 0)       # same block every step -> DMA'd once
    else:
        adj_st = jnp.stack([_pad2(a, Np, Np) for a in adjs]).astype(cdt)
        adj_map = lambda b: (b, 0, 0)

    flops = 2 * B * (Np * Fin * Hp + Np * Np * Hp + Np * Hp * Cp
                     + Np * Np * Cp + Np * Fin * Cp)
    bytes_accessed = int(
        (adj_st.size + x_st.size
         + kp["w1"].size + kp["w2"].size + kp["wr"].size) * itemsize
        + (kp["b1"].size + kp["b2"].size + kp["br"].size) * 4
        + B * Np * Cp * 4)

    return pl.pallas_call(
        _gcn_block_kernel,
        out_shape=jax.ShapeDtypeStruct((B, Np, Cp), jnp.float32),
        grid_spec=pltpu.PrefetchScalarGridSpec(
            num_scalar_prefetch=0,
            grid=(B,),
            in_specs=[
                pl.BlockSpec((None, Np, Np), adj_map),           # adjacency
                pl.BlockSpec((None, Np, Fin), lambda b: (b, 0, 0)),  # features
                pl.BlockSpec((Fin, Hp), lambda b: (0, 0)),       # W1 (resident)
                pl.BlockSpec((1, Hp), lambda b: (0, 0)),         # b1
                pl.BlockSpec((Hp, Cp), lambda b: (0, 0)),        # W2 (resident)
                pl.BlockSpec((1, Cp), lambda b: (0, 0)),         # b2
                pl.BlockSpec((Fin, Cp), lambda b: (0, 0)),       # fc1 W (resident)
                pl.BlockSpec((1, Cp), lambda b: (0, 0)),         # fc1 b
            ],
            out_specs=pl.BlockSpec((None, Np, Cp), lambda b: (b, 0, 0)),
        ),
        compiler_params=pltpu.CompilerParams(
            dimension_semantics=("parallel",),    # batch axis -> v7x 2nd TC
        ),
        cost_estimate=pl.CostEstimate(flops=flops, transcendentals=0,
                                      bytes_accessed=bytes_accessed),
    )(adj_st, x_st, kp["w1"], kp["b1"], kp["w2"], kp["b2"], kp["wr"], kp["br"])


# ----------------------------------------------------------------------------
# Model glue (pure JAX): weight prep (once, outside jit), pooling, tiny head.
# ----------------------------------------------------------------------------
def prepare_params(params, compute_dtype=jnp.float32):
    """Pad GCN/fc1 weights to 128-lane-dense shapes ONCE (call outside jit).

    compute_dtype=jnp.bfloat16 is the v6e/v7x fast path (f32 accumulation is
    kept inside the kernel); default f32 for bit-for-bit-ish accuracy.
    """
    nfeat, nhid = params["gc1_w"].shape
    nclass = params["gc2_w"].shape[1]
    Hp = _round_up(nhid, LANE)
    Cp = _round_up(nclass, LANE)
    f32 = jnp.float32
    return {
        "w1": _pad2(params["gc1_w"].astype(compute_dtype), nfeat, Hp),
        "b1": _pad2(params["gc1_b"].reshape(1, -1).astype(f32), 1, Hp),
        "w2": _pad2(params["gc2_w"].astype(compute_dtype), Hp, Cp),
        "b2": _pad2(params["gc2_b"].reshape(1, -1).astype(f32), 1, Cp),
        "wr": _pad2(params["fc1_wT"].astype(compute_dtype), nfeat, Cp),
        "br": _pad2(params["fc1_b"].reshape(1, -1).astype(f32), 1, Cp),
        # fc head: tiny (4 x <=64), left to XLA, weights already (in, out)
        "fc2_w": params["fc2_w"], "fc2_b": params["fc2_b"],
        "fc3_w": params["fc3_w"], "fc3_b": params["fc3_b"],
        "fc4_w": params["fc4_w"], "fc4_b": params["fc4_b"],
        "fc5_w": params["fc5_w"], "fc5_b": params["fc5_b"],
    }


def sum_pool(h, n_graphs=4):
    # graph_pool_* in the reference are rows of ones over each node block,
    # i.e. per-graph SUM pooling -> reshape + sum (pure VPU work).
    N, C = h.shape
    return h.reshape(n_graphs, N // n_graphs, C).sum(axis=1)


def head(d, p):
    d = jnp.maximum(d @ p["fc2_w"] + p["fc2_b"], 0.0)
    d = jnp.maximum(d @ p["fc3_w"] + p["fc3_b"], 0.0)
    d = jnp.maximum(d @ p["fc4_w"] + p["fc4_b"], 0.0)
    return d @ p["fc5_w"] + p["fc5_b"]


def my_new_gcn_forward(kp,
                       solute_ACE, solvent_ACE, solute_adj, solvent_adj_ACE,
                       solute_NMF, solvent_NMF, solvent_adj_NMF,
                       solute_meth, solvent_meth, solvent_adj_meth):
    nclass = kp["fc2_w"].shape[1]

    # --- three solute branches share solute_adj -> one fused pallas_call (B=3)
    su_x = [solute_ACE, solute_NMF, solute_meth]
    h_su = gcn_block_batched(solute_adj, su_x, kp, shared_adj=True)
    su = [sum_pool(h_su[b, :su_x[b].shape[0], :nclass]) for b in range(3)]

    # --- three solvent branches, distinct adjacencies -> one fused pallas_call
    sv_x = [solvent_ACE, solvent_NMF, solvent_meth]
    sv_adj = [solvent_adj_ACE, solvent_adj_NMF, solvent_adj_meth]
    h_sv = gcn_block_batched(sv_adj, sv_x, kp, shared_adj=False)
    sv = [sum_pool(h_sv[b, :sv_x[b].shape[0], :nclass]) for b in range(3)]

    d = [head(jnp.concatenate([su[i], sv[i]], axis=1), kp) for i in range(3)]
    return jnp.concatenate(d, axis=0)                       # (12, 1)


def init_params(key, nfeat, nhid, nclass):
    ks = jax.random.split(key, 14)
    s = 0.1

    def w(k, shape):
        return (s * jax.random.normal(k, shape)).astype(jnp.float32)

    return {
        # GraphConvolution weights: (in, out)
        "gc1_w": w(ks[0], (nfeat, nhid)), "gc1_b": w(ks[1], (nhid,)),
        "gc2_w": w(ks[2], (nhid, nclass)), "gc2_b": w(ks[3], (nclass,)),
        # nn.Linear weights stored pre-transposed: (in, out)
        "fc1_wT": w(ks[4], (nfeat, nclass)), "fc1_b": w(ks[5], (nclass,)),
        "fc2_w": w(ks[6], (2 * nclass, nclass)), "fc2_b": w(ks[7], (nclass,)),
        "fc3_w": w(ks[8], (nclass, 64)), "fc3_b": w(ks[9], (64,)),
        "fc4_w": w(ks[10], (64, 32)), "fc4_b": w(ks[11], (32,)),
        "fc5_w": w(ks[12], (32, 1)), "fc5_b": w(ks[13], (1,)),
    }


# ----------------------------------------------------------------------------
# Pure-JAX reference (correctness check of the fused kernel path).
# ----------------------------------------------------------------------------
def _ref_branch(p, x_su, x_sv, adj_su, adj_sv):
    def gc_pair(adj, x):
        init = x @ p["fc1_wT"] + p["fc1_b"]
        h1 = jnp.maximum(adj @ (x @ p["gc1_w"]) + p["gc1_b"], 0.0)
        return adj @ (h1 @ p["gc2_w"]) + p["gc2_b"] + init

    su = sum_pool(gc_pair(adj_su, x_su))
    sv = sum_pool(gc_pair(adj_sv, x_sv))
    return head(jnp.concatenate([su, sv], axis=1), p)


def _ref_forward(params,
                 solute_ACE, solvent_ACE, solute_adj, solvent_adj_ACE,
                 solute_NMF, solvent_NMF, solvent_adj_NMF,
                 solute_meth, solvent_meth, solvent_adj_meth):
    d1 = _ref_branch(params, solute_ACE, solvent_ACE, solute_adj, solvent_adj_ACE)
    d2 = _ref_branch(params, solute_NMF, solvent_NMF, solute_adj, solvent_adj_NMF)
    d3 = _ref_branch(params, solute_meth, solvent_meth, solute_adj, solvent_adj_meth)
    return jnp.concatenate([d1, d2, d3], axis=0)


# ----------------------------------------------------------------------------
if __name__ == "__main__":
    key = jax.random.PRNGKey(0)

    # Small, shape-consistent example sizes (4 graphs per pool, like the module)
    nfeat, nhid, nclass = 16, 32, 8
    n_solute = 12                                 # nodes per solute graph -> 48 total
    n_sv_ace, n_sv_nmf, n_sv_met = 16, 20, 24     # solvent nodes per graph

    N_su = 4 * n_solute
    N_ace, N_nmf, N_met = 4 * n_sv_ace, 4 * n_sv_nmf, 4 * n_sv_met

    keys = jax.random.split(key, 12)
    solute_ACE = jax.random.normal(keys[0], (N_su, nfeat), jnp.float32)
    solvent_ACE = jax.random.normal(keys[1], (N_ace, nfeat), jnp.float32)
    solute_adj = jax.random.uniform(keys[2], (N_su, N_su), jnp.float32)
    solvent_adj_ACE = jax.random.uniform(keys[3], (N_ace, N_ace), jnp.float32)
    solute_NMF = jax.random.normal(keys[4], (N_su, nfeat), jnp.float32)
    solvent_NMF = jax.random.normal(keys[5], (N_nmf, nfeat), jnp.float32)
    solvent_adj_NMF = jax.random.uniform(keys[6], (N_nmf, N_nmf), jnp.float32)
    solute_meth = jax.random.normal(keys[7], (N_su, nfeat), jnp.float32)
    solvent_meth = jax.random.normal(keys[8], (N_met, nfeat), jnp.float32)
    solvent_adj_meth = jax.random.uniform(keys[9], (N_met, N_met), jnp.float32)

    params = init_params(keys[10], nfeat, nhid, nclass)
    kp = prepare_params(params)          # weight padding hoisted out of the jit
    # For large graphs on v6e/v7x use: kp = prepare_params(params, jnp.bfloat16)

    inputs = (solute_ACE, solvent_ACE, solute_adj, solvent_adj_ACE,
              solute_NMF, solvent_NMF, solvent_adj_NMF,
              solute_meth, solvent_meth, solvent_adj_meth)

    fwd = jax.jit(my_new_gcn_forward)
    out = jax.block_until_ready(fwd(kp, *inputs))
    assert out.shape == (12, 1), out.shape

    ref = jax.block_until_ready(jax.jit(_ref_forward)(params, *inputs))
    assert jnp.allclose(out, ref, rtol=2e-3, atol=2e-3), (
        float(jnp.max(jnp.abs(out - ref))))

    print("KERNEL_OK")
</pallas_src>

<mosaic_0001>
module attributes {stable_mosaic.version = 11 : i64} {
  func.func @_gcn_block_kernel(%arg0: i32, %arg1: memref<1x128x128xf32, #tpu.memory_space<vmem>>, %arg2: memref<1x128x16xf32, #tpu.memory_space<vmem>>, %arg3: memref<16x128xf32, #tpu.memory_space<vmem>>, %arg4: memref<1x128xf32, #tpu.memory_space<vmem>>, %arg5: memref<128x128xf32, #tpu.memory_space<vmem>>, %arg6: memref<1x128xf32, #tpu.memory_space<vmem>>, %arg7: memref<16x128xf32, #tpu.memory_space<vmem>>, %arg8: memref<1x128xf32, #tpu.memory_space<vmem>>, %arg9: memref<1x128x128xf32, #tpu.memory_space<vmem>>) attributes {dimension_semantics = [#tpu.dimension_semantics<parallel>], iteration_bounds = array<i64: 3>, scalar_prefetch = 0 : i64, scratch_operands = 0 : i64, tpu.core_type = #tpu.core_type<tc>, window_params = [{transform_indices = @transform_0, window_bounds = array<i64: 1, 128, 128>}, {transform_indices = @transform_1, window_bounds = array<i64: 1, 128, 16>}, {pipeline_mode = #tpu.pipeline_mode<synchronous>, transform_indices = @transform_2, window_bounds = array<i64: 16, 128>}, {pipeline_mode = #tpu.pipeline_mode<synchronous>, transform_indices = @transform_3, window_bounds = array<i64: 1, 128>}, {pipeline_mode = #tpu.pipeline_mode<synchronous>, transform_indices = @transform_4, window_bounds = array<i64: 128, 128>}, {pipeline_mode = #tpu.pipeline_mode<synchronous>, transform_indices = @transform_5, window_bounds = array<i64: 1, 128>}, {pipeline_mode = #tpu.pipeline_mode<synchronous>, transform_indices = @transform_6, window_bounds = array<i64: 16, 128>}, {pipeline_mode = #tpu.pipeline_mode<synchronous>, transform_indices = @transform_7, window_bounds = array<i64: 1, 128>}, {transform_indices = @transform_8, window_bounds = array<i64: 1, 128, 128>}]} {
    %c0 = arith.constant 0 : index
    %c0_0 = arith.constant 0 : index
    %c0_1 = arith.constant 0 : index
    %0 = vector.load %arg1[%c0, %c0_0, %c0_1] : memref<1x128x128xf32, #tpu.memory_space<vmem>>, vector<1x128x128xf32>
    %1 = vector.shape_cast %0 : vector<1x128x128xf32> to vector<128x128xf32>
    %c0_2 = arith.constant 0 : index
    %c0_3 = arith.constant 0 : index
    %c0_4 = arith.constant 0 : index
    %2 = vector.load %arg2[%c0_2, %c0_3, %c0_4] : memref<1x128x16xf32, #tpu.memory_space<vmem>>, vector<1x128x16xf32>
    %3 = vector.shape_cast %2 : vector<1x128x16xf32> to vector<128x16xf32>
    %c0_5 = arith.constant 0 : index
    %c0_6 = arith.constant 0 : index
    %4 = vector.load %arg3[%c0_5, %c0_6] : memref<16x128xf32, #tpu.memory_space<vmem>>, vector<16x128xf32>
    %cst = arith.constant dense<0.000000e+00> : vector<128x128xf32>
    %5 = tpu.matmul %3, %4, %cst {dimension_numbers = #tpu.dot_dimension_numbers<[1], [0], [0], [1], [0, 0, 1, 1], [], []>} : vector<128x16xf32>, vector<16x128xf32>, vector<128x128xf32> -> vector<128x128xf32>
    %cst_7 = arith.constant dense<0.000000e+00> : vector<128x128xf32>
    %6 = tpu.matmul %1, %5, %cst_7 {dimension_numbers = #tpu.dot_dimension_numbers<[1], [0], [0], [1], [0, 0, 1, 1], [], []>} : vector<128x128xf32>, vector<128x128xf32>, vector<128x128xf32> -> vector<128x128xf32>
    %c0_8 = arith.constant 0 : index
    %c0_9 = arith.constant 0 : index
    %7 = vector.load %arg4[%c0_8, %c0_9] : memref<1x128xf32, #tpu.memory_space<vmem>>, vector<1x128xf32>
    %8 = vector.broadcast %7 : vector<1x128xf32> to vector<128x128xf32>
    %9 = arith.addf %6, %8 : vector<128x128xf32>
    %cst_10 = arith.constant 0.000000e+00 : f32
    %10 = vector.broadcast %cst_10 : f32 to vector<128x128xf32>
    %11 = arith.maximumf %9, %10 : vector<128x128xf32>
    %c0_11 = arith.constant 0 : index
    %c0_12 = arith.constant 0 : index
    %12 = vector.load %arg5[%c0_11, %c0_12] : memref<128x128xf32, #tpu.memory_space<vmem>>, vector<128x128xf32>
    %cst_13 = arith.constant dense<0.000000e+00> : vector<128x128xf32>
    %13 = tpu.matmul %11, %12, %cst_13 {dimension_numbers = #tpu.dot_dimension_numbers<[1], [0], [0], [1], [0, 0, 1, 1], [], []>} : vector<128x128xf32>, vector<128x128xf32>, vector<128x128xf32> -> vector<128x128xf32>
    %cst_14 = arith.constant dense<0.000000e+00> : vector<128x128xf32>
    %14 = tpu.matmul %1, %13, %cst_14 {dimension_numbers = #tpu.dot_dimension_numbers<[1], [0], [0], [1], [0, 0, 1, 1], [], []>} : vector<128x128xf32>, vector<128x128xf32>, vector<128x128xf32> -> vector<128x128xf32>
    %c0_15 = arith.constant 0 : index
    %c0_16 = arith.constant 0 : index
    %15 = vector.load %arg6[%c0_15, %c0_16] : memref<1x128xf32, #tpu.memory_space<vmem>>, vector<1x128xf32>
    %16 = vector.broadcast %15 : vector<1x128xf32> to vector<128x128xf32>
    %17 = arith.addf %14, %16 : vector<128x128xf32>
    %c0_17 = arith.constant 0 : index
    %c0_18 = arith.constant 0 : index
    %18 = vector.load %arg7[%c0_17, %c0_18] : memref<16x128xf32, #tpu.memory_space<vmem>>, vector<16x128xf32>
    %cst_19 = arith.constant dense<0.000000e+00> : vector<128x128xf32>
    %19 = tpu.matmul %3, %18, %cst_19 {dimension_numbers = #tpu.dot_dimension_numbers<[1], [0], [0], [1], [0, 0, 1, 1], [], []>} : vector<128x16xf32>, vector<16x128xf32>, vector<128x128xf32> -> vector<128x128xf32>
    %20 = arith.addf %17, %19 : vector<128x128xf32>
    %c0_20 = arith.constant 0 : index
    %c0_21 = arith.constant 0 : index
    %21 = vector.load %arg8[%c0_20, %c0_21] : memref<1x128xf32, #tpu.memory_space<vmem>>, vector<1x128xf32>
    %22 = vector.broadcast %21 : vector<1x128xf32> to vector<128x128xf32>
    %23 = arith.addf %20, %22 : vector<128x128xf32>
    %c0_22 = arith.constant 0 : index
    %c0_23 = arith.constant 0 : index
    %c0_24 = arith.constant 0 : index
    %24 = vector.load %arg9[%c0_22, %c0_23, %c0_24] : memref<1x128x128xf32, #tpu.memory_space<vmem>>, vector<1x128x128xf32>
    %25 = vector.shape_cast %24 : vector<1x128x128xf32> to vector<128x128xf32>
    %26 = vector.shape_cast %23 : vector<128x128xf32> to vector<1x128x128xf32>
    tpu.vector_store %arg9[%c0_22, %c0_23, %c0_24], %26 {strides = array<i32>} : memref<1x128x128xf32, #tpu.memory_space<vmem>>, vector<1x128x128xf32>,
    return
  }
  func.func @transform_0(%arg0: i32) -> (i32, i32, i32) {
    %c0_i32 = arith.constant 0 : i32
    %c0_i32_0 = arith.constant 0 : i32
    %c0_i32_1 = arith.constant 0 : i32
    return %arg0, %c0_i32, %c0_i32_0 : i32, i32, i32
  }
  func.func @transform_1(%arg0: i32) -> (i32, i32, i32) {
    %c0_i32 = arith.constant 0 : i32
    %c0_i32_0 = arith.constant 0 : i32
    %c0_i32_1 = arith.constant 0 : i32
    return %arg0, %c0_i32, %c0_i32_0 : i32, i32, i32
  }
  func.func @transform_2(%arg0: i32) -> (i32, i32) {
    %c0_i32 = arith.constant 0 : i32
    %c0_i32_0 = arith.constant 0 : i32
    %c0_i32_1 = arith.constant 0 : i32
    return %c0_i32, %c0_i32_0 : i32, i32
  }
  func.func @transform_3(%arg0: i32) -> (i32, i32) {
    %c0_i32 = arith.constant 0 : i32
    %c0_i32_0 = arith.constant 0 : i32
    %c0_i32_1 = arith.constant 0 : i32
    return %c0_i32, %c0_i32_0 : i32, i32
  }
  func.func @transform_4(%arg0: i32) -> (i32, i32) {
    %c0_i32 = arith.constant 0 : i32
    %c0_i32_0 = arith.constant 0 : i32
    %c0_i32_1 = arith.constant 0 : i32
    return %c0_i32, %c0_i32_0 : i32, i32
  }
  func.func @transform_5(%arg0: i32) -> (i32, i32) {
    %c0_i32 = arith.constant 0 : i32
    %c0_i32_0 = arith.constant 0 : i32
    %c0_i32_1 = arith.constant 0 : i32
    return %c0_i32, %c0_i32_0 : i32, i32
  }
  func.func @transform_6(%arg0: i32) -> (i32, i32) {
    %c0_i32 = arith.constant 0 : i32
    %c0_i32_0 = arith.constant 0 : i32
    %c0_i32_1 = arith.constant 0 : i32
    return %c0_i32, %c0_i32_0 : i32, i32
  }
  func.func @transform_7(%arg0: i32) -> (i32, i32) {
    %c0_i32 = arith.constant 0 : i32
    %c0_i32_0 = arith.constant 0 : i32
    %c0_i32_1 = arith.constant 0 : i32
    return %c0_i32, %c0_i32_0 : i32, i32
  }
  func.func @transform_8(%arg0: i32) -> (i32, i32, i32) {
    %c0_i32 = arith.constant 0 : i32
    %c0_i32_0 = arith.constant 0 : i32
    %c0_i32_1 = arith.constant 0 : i32
    return %arg0, %c0_i32, %c0_i32_0 : i32, i32, i32
  }
}

module attributes {stable_mosaic.version = 11 : i64} {
  func.func @_gcn_block_kernel(%arg0: i32, %arg1: memref<1x128x128xf32, #tpu.memory_space<vmem>>, %arg2: memref<1x128x16xf32, #tpu.memory_space<vmem>>, %arg3: memref<16x128xf32, #tpu.memory_space<vmem>>, %arg4: memref<1x128xf32, #tpu.memory_space<vmem>>, %arg5: memref<128x128xf32, #tpu.memory_space<vmem>>, %arg6: memref<1x128xf32, #tpu.memory_space<vmem>>, %arg7: memref<16x128xf32, #tpu.memory_space<vmem>>, %arg8: memref<1x128xf32, #tpu.memory_space<vmem>>, %arg9: memref<1x128x128xf32, #tpu.memory_space<vmem>>) attributes {dimension_semantics = [#tpu.dimension_semantics<parallel>], iteration_bounds = array<i64: 3>, scalar_prefetch = 0 : i64, scratch_operands = 0 : i64, tpu.core_type = #tpu.core_type<tc>, window_params = [{pipeline_mode = #tpu.pipeline_mode<synchronous>, transform_indices = @transform_0, window_bounds = array<i64: 1, 128, 128>}, {transform_indices = @transform_1, window_bounds = array<i64: 1, 128, 16>}, {pipeline_mode = #tpu.pipeline_mode<synchronous>, transform_indices = @transform_2, window_bounds = array<i64: 16, 128>}, {pipeline_mode = #tpu.pipeline_mode<synchronous>, transform_indices = @transform_3, window_bounds = array<i64: 1, 128>}, {pipeline_mode = #tpu.pipeline_mode<synchronous>, transform_indices = @transform_4, window_bounds = array<i64: 128, 128>}, {pipeline_mode = #tpu.pipeline_mode<synchronous>, transform_indices = @transform_5, window_bounds = array<i64: 1, 128>}, {pipeline_mode = #tpu.pipeline_mode<synchronous>, transform_indices = @transform_6, window_bounds = array<i64: 16, 128>}, {pipeline_mode = #tpu.pipeline_mode<synchronous>, transform_indices = @transform_7, window_bounds = array<i64: 1, 128>}, {transform_indices = @transform_8, window_bounds = array<i64: 1, 128, 128>}]} {
    %c0 = arith.constant 0 : index
    %c0_0 = arith.constant 0 : index
    %c0_1 = arith.constant 0 : index
    %0 = vector.load %arg1[%c0, %c0_0, %c0_1] : memref<1x128x128xf32, #tpu.memory_space<vmem>>, vector<1x128x128xf32>
    %1 = vector.shape_cast %0 : vector<1x128x128xf32> to vector<128x128xf32>
    %c0_2 = arith.constant 0 : index
    %c0_3 = arith.constant 0 : index
    %c0_4 = arith.constant 0 : index
    %2 = vector.load %arg2[%c0_2, %c0_3, %c0_4] : memref<1x128x16xf32, #tpu.memory_space<vmem>>, vector<1x128x16xf32>
    %3 = vector.shape_cast %2 : vector<1x128x16xf32> to vector<128x16xf32>
    %c0_5 = arith.constant 0 : index
    %c0_6 = arith.constant 0 : index
    %4 = vector.load %arg3[%c0_5, %c0_6] : memref<16x128xf32, #tpu.memory_space<vmem>>, vector<16x128xf32>
    %cst = arith.constant dense<0.000000e+00> : vector<128x128xf32>
    %5 = tpu.matmul %3, %4, %cst {dimension_numbers = #tpu.dot_dimension_numbers<[1], [0], [0], [1], [0, 0, 1, 1], [], []>} : vector<128x16xf32>, vector<16x128xf32>, vector<128x128xf32> -> vector<128x128xf32>
    %cst_7 = arith.constant dense<0.000000e+00> : vector<128x128xf32>
    %6 = tpu.matmul %1, %5, %cst_7 {dimension_numbers = #tpu.dot_dimension_numbers<[1], [0], [0], [1], [0, 0, 1, 1], [], []>} : vector<128x128xf32>, vector<128x128xf32>, vector<128x128xf32> -> vector<128x128xf32>
    %c0_8 = arith.constant 0 : index
    %c0_9 = arith.constant 0 : index
    %7 = vector.load %arg4[%c0_8, %c0_9] : memref<1x128xf32, #tpu.memory_space<vmem>>, vector<1x128xf32>
    %8 = vector.broadcast %7 : vector<1x128xf32> to vector<128x128xf32>
    %9 = arith.addf %6, %8 : vector<128x128xf32>
    %cst_10 = arith.constant 0.000000e+00 : f32
    %10 = vector.broadcast %cst_10 : f32 to vector<128x128xf32>
    %11 = arith.maximumf %9, %10 : vector<128x128xf32>
    %c0_11 = arith.constant 0 : index
    %c0_12 = arith.constant 0 : index
    %12 = vector.load %arg5[%c0_11, %c0_12] : memref<128x128xf32, #tpu.memory_space<vmem>>, vector<128x128xf32>
    %cst_13 = arith.constant dense<0.000000e+00> : vector<128x128xf32>
    %13 = tpu.matmul %11, %12, %cst_13 {dimension_numbers = #tpu.dot_dimension_numbers<[1], [0], [0], [1], [0, 0, 1, 1], [], []>} : vector<128x128xf32>, vector<128x128xf32>, vector<128x128xf32> -> vector<128x128xf32>
    %cst_14 = arith.constant dense<0.000000e+00> : vector<128x128xf32>
    %14 = tpu.matmul %1, %13, %cst_14 {dimension_numbers = #tpu.dot_dimension_numbers<[1], [0], [0], [1], [0, 0, 1, 1], [], []>} : vector<128x128xf32>, vector<128x128xf32>, vector<128x128xf32> -> vector<128x128xf32>
    %c0_15 = arith.constant 0 : index
    %c0_16 = arith.constant 0 : index
    %15 = vector.load %arg6[%c0_15, %c0_16] : memref<1x128xf32, #tpu.memory_space<vmem>>, vector<1x128xf32>
    %16 = vector.broadcast %15 : vector<1x128xf32> to vector<128x128xf32>
    %17 = arith.addf %14, %16 : vector<128x128xf32>
    %c0_17 = arith.constant 0 : index
    %c0_18 = arith.constant 0 : index
    %18 = vector.load %arg7[%c0_17, %c0_18] : memref<16x128xf32, #tpu.memory_space<vmem>>, vector<16x128xf32>
    %cst_19 = arith.constant dense<0.000000e+00> : vector<128x128xf32>
    %19 = tpu.matmul %3, %18, %cst_19 {dimension_numbers = #tpu.dot_dimension_numbers<[1], [0], [0], [1], [0, 0, 1, 1], [], []>} : vector<128x16xf32>, vector<16x128xf32>, vector<128x128xf32> -> vector<128x128xf32>
    %20 = arith.addf %17, %19 : vector<128x128xf32>
    %c0_20 = arith.constant 0 : index
    %c0_21 = arith.constant 0 : index
    %21 = vector.load %arg8[%c0_20, %c0_21] : memref<1x128xf32, #tpu.memory_space<vmem>>, vector<1x128xf32>
    %22 = vector.broadcast %21 : vector<1x128xf32> to vector<128x128xf32>
    %23 = arith.addf %20, %22 : vector<128x128xf32>
    %c0_22 = arith.constant 0 : index
    %c0_23 = arith.constant 0 : index
    %c0_24 = arith.constant 0 : index
    %24 = vector.load %arg9[%c0_22, %c0_23, %c0_24] : memref<1x128x128xf32, #tpu.memory_space<vmem>>, vector<1x128x128xf32>
    %25 = vector.shape_cast %24 : vector<1x128x128xf32> to vector<128x128xf32>
    %26 = vector.shape_cast %23 : vector<128x128xf32> to vector<1x128x128xf32>
    tpu.vector_store %arg9[%c0_22, %c0_23, %c0_24], %26 {strides = array<i32>} : memref<1x128x128xf32, #tpu.memory_space<vmem>>, vector<1x128x128xf32>,
    return
  }
  func.func @transform_0(%arg0: i32) -> (i32, i32, i32) {
    %c0_i32 = arith.constant 0 : i32
    %c0_i32_0 = arith.constant 0 : i32
    %c0_i32_1 = arith.constant 0 : i32
    %c0_i32_2 = arith.constant 0 : i32
    return %c0_i32, %c0_i32_0, %c0_i32_1 : i32, i32, i32
  }
  func.func @transform_1(%arg0: i32) -> (i32, i32, i32) {
    %c0_i32 = arith.constant 0 : i32
    %c0_i32_0 = arith.constant 0 : i32
    %c0_i32_1 = arith.constant 0 : i32
    return %arg0, %c0_i32, %c0_i32_0 : i32, i32, i32
  }
  func.func @transform_2(%arg0: i32) -> (i32, i32) {
    %c0_i32 = arith.constant 0 : i32
    %c0_i32_0 = arith.constant 0 : i32
    %c0_i32_1 = arith.constant 0 : i32
    return %c0_i32, %c0_i32_0 : i32, i32
  }
  func.func @transform_3(%arg0: i32) -> (i32, i32) {
    %c0_i32 = arith.constant 0 : i32
    %c0_i32_0 = arith.constant 0 : i32
    %c0_i32_1 = arith.constant 0 : i32
    return %c0_i32, %c0_i32_0 : i32, i32
  }
  func.func @transform_4(%arg0: i32) -> (i32, i32) {
    %c0_i32 = arith.constant 0 : i32
    %c0_i32_0 = arith.constant 0 : i32
    %c0_i32_1 = arith.constant 0 : i32
    return %c0_i32, %c0_i32_0 : i32, i32
  }
  func.func @transform_5(%arg0: i32) -> (i32, i32) {
    %c0_i32 = arith.constant 0 : i32
    %c0_i32_0 = arith.constant 0 : i32
    %c0_i32_1 = arith.constant 0 : i32
    return %c0_i32, %c0_i32_0 : i32, i32
  }
  func.func @transform_6(%arg0: i32) -> (i32, i32) {
    %c0_i32 = arith.constant 0 : i32
    %c0_i32_0 = arith.constant 0 : i32
    %c0_i32_1 = arith.constant 0 : i32
    return %c0_i32, %c0_i32_0 : i32, i32
  }
  func.func @transform_7(%arg0: i32) -> (i32, i32) {
    %c0_i32 = arith.constant 0 : i32
    %c0_i32_0 = arith.constant 0 : i32
    %c0_i32_1 = arith.constant 0 : i32
    return %c0_i32, %c0_i32_0 : i32, i32
  }
  func.func @transform_8(%arg0: i32) -> (i32, i32, i32) {
    %c0_i32 = arith.constant 0 : i32
    %c0_i32_0 = arith.constant 0 : i32
    %c0_i32_1 = arith.constant 0 : i32
    return %arg0, %c0_i32, %c0_i32_0 : i32, i32, i32
  }
}

</mosaic_0001>

<bundles_post_ra>
// kernel: squeeze.10
= control target key start
LH: loop header
LB: loop body
LE: loop exit
PB: predicated region body
PF: predicated region fallthrough
CT: control target
= control target key end

     0   :  { %vm3_vm0 = vcmask 162816   ;;  %s94_s8 = smov 68   ;;  %s95_s9 = smov 88   ;;  %s141_s0 = inlined_call_operand.vmem [shape: f32[1,80,8], index: 0, kind: input, shape index: {}]   ;;  %s142_s1 = inlined_call_operand.vmem [shape: f32[4,20,8], index: 1, kind: output, shape index: {}]  }
   0x1   :  { %v6_v0 = vld [vmem:[%s141_s0] sm:$0xff]   ;;  %s93_s0 = smov 108  }
   0x2   :  { %7 = vrot.lane.b32.xlu0 %v6_v0, %s93_s0  ;;  %23 = vrot.lane.b32.xlu1 %v6_v0, %s94_s8  ;;  %5 = vst.msk [vmem:[#allocation0] ss:$8 sm:$0xf0] %vm3_vm0, %v6_v0   ;;  %4 = vst.msk [vmem:[#allocation0] ss:$8 sm:$0xf] %vm3_vm0, %v6_v0  }
   0x6   :  { %15 = vrot.lane.b32.xlu0 %v6_v0, %s95_s9 }
  0x74   :  { %v8_v1 = vpop.permute.xlu0 %7   ;;  %v24_v2 = vpop.permute.xlu1 %23  }
  0x75   :  { %11 = vst.msk [vmem:[#allocation0 + $0x1] ss:$8 sm:$0xf] %vm3_vm0, %v8_v1   ;;  %13 = vst.msk [vmem:[#allocation0 + $0x1] ss:$8 sm:$0xf0] %vm3_vm0, %v8_v1  }
  0x76   :  { %27 = vst.msk [vmem:[#allocation0 + $0x3] ss:$8 sm:$0xf] %vm3_vm0, %v24_v2   ;;  %29 = vst.msk [vmem:[#allocation0 + $0x3] ss:$8 sm:$0xf0] %vm3_vm0, %v24_v2  }
  0x78   :  { %v16_v3 = vpop.permute.xlu0 %15  }
  0x79   :  { %19 = vst.msk [vmem:[#allocation0 + $0x2] ss:$8 sm:$0xf] %vm3_vm0, %v16_v3   ;;  %21 = vst.msk [vmem:[#allocation0 + $0x2] ss:$8 sm:$0xf0] %vm3_vm0, %v16_v3  }
  0x80   :  { %v33_v4 = vld [vmem:[#allocation0] sm:$0xf]  ;;  %v37_v5 = vld [vmem:[#allocation0 + $0x8] sm:$0xf]  ;;  %v42_v6 = vld [vmem:[#allocation0 + $0x10] sm:$0xf] }
  0x81   :  { %35 = vst [vmem:[%s142_s1] sm:$0xf] %v33_v4  ;;  %83 = vst [vmem:[%s142_s1 + $0x4] sm:$0xf] %v37_v5  ;;  %v48_v7 = vld [vmem:[#allocation0 + $0x18] sm:$0xf] }
  0x82   :  { %84 = vst [vmem:[%s142_s1 + $0x8] sm:$0xf] %v42_v6  ;;  %v54_v8 = vld [vmem:[#allocation0 + $0x20] sm:$0xf]  ;;  %v60_v9 = vld [vmem:[#allocation0 + $0x28] sm:$0xf] }
  0x83   :  { %85 = vst [vmem:[%s142_s1 + $0xc] sm:$0xf] %v48_v7  ;;  %86 = vst [vmem:[%s142_s1 + $0x10] sm:$0xf] %v54_v8  ;;  %v66_v10 = vld [vmem:[#allocation0 + $0x30] sm:$0xf] }
  0x84   :  { %87 = vst [vmem:[%s142_s1 + $0x14] sm:$0xf] %v60_v9  ;;  %v72_v11 = vld [vmem:[#allocation0 + $0x38] sm:$0xf]  ;;  %88 = vst [vmem:[%s142_s1 + $0x18] sm:$0xf] %v66_v10 }
  0x85   :  { %89 = vst [vmem:[%s142_s1 + $0x1c] sm:$0xf] %v72_v11 }

// kernel: squeeze.7
= control target key start
LH: loop header
LB: loop body
LE: loop exit
PB: predicated region body
PF: predicated region fallthrough
CT: control target
= control target key end

     0   :  { %vm3_vm0 = vcmask 97280   ;;  %s94_s8 = smov 92   ;;  %s95_s9 = smov 104   ;;  %s141_s0 = inlined_call_operand.vmem [shape: f32[1,48,8], index: 0, kind: input, shape index: {}]   ;;  %s142_s1 = inlined_call_operand.vmem [shape: f32[4,12,8], index: 1, kind: output, shape index: {}]  }
   0x1   :  { %v6_v0 = vld [vmem:[%s141_s0] sm:$0xff]   ;;  %s93_s0 = smov 116  }
   0x2   :  { %7 = vrot.lane.b32.xlu0 %v6_v0, %s93_s0  ;;  %23 = vrot.lane.b32.xlu1 %v6_v0, %s94_s8  ;;  %5 = vst.msk [vmem:[#allocation0] ss:$8 sm:$0xf0] %vm3_vm0, %v6_v0   ;;  %4 = vst.msk [vmem:[#allocation0] ss:$8 sm:$0xf] %vm3_vm0, %v6_v0  }
   0x6   :  { %15 = vrot.lane.b32.xlu0 %v6_v0, %s95_s9 }
  0x74   :  { %v8_v1 = vpop.permute.xlu0 %7   ;;  %v24_v2 = vpop.permute.xlu1 %23  }
  0x75   :  { %11 = vst.msk [vmem:[#allocation0 + $0x1] ss:$8 sm:$0xf] %vm3_vm0, %v8_v1   ;;  %13 = vst.msk [vmem:[#allocation0 + $0x1] ss:$8 sm:$0xf0] %vm3_vm0, %v8_v1  }
  0x76   :  { %27 = vst.msk [vmem:[#allocation0 + $0x3] ss:$8 sm:$0xf] %vm3_vm0, %v24_v2   ;;  %29 = vst.msk [vmem:[#allocation0 + $0x3] ss:$8 sm:$0xf0] %vm3_vm0, %v24_v2  }
  0x78   :  { %v16_v3 = vpop.permute.xlu0 %15  }
  0x79   :  { %19 = vst.msk [vmem:[#allocation0 + $0x2] ss:$8 sm:$0xf] %vm3_vm0, %v16_v3   ;;  %21 = vst.msk [vmem:[#allocation0 + $0x2] ss:$8 sm:$0xf0] %vm3_vm0, %v16_v3  }
  0x80   :  { %v33_v4 = vld [vmem:[#allocation0] sm:$0xf]  ;;  %v37_v5 = vld [vmem:[#allocation0 + $0x8] sm:$0xf]  ;;  %v42_v6 = vld [vmem:[#allocation0 + $0x10] sm:$0xf] }
  0x81   :  { %35 = vst [vmem:[%s142_s1] sm:$0xf] %v33_v4  ;;  %83 = vst [vmem:[%s142_s1 + $0x4] sm:$0xf] %v37_v5  ;;  %v48_v7 = vld [vmem:[#allocation0 + $0x18] sm:$0xf] }
  0x82   :  { %84 = vst [vmem:[%s142_s1 + $0x8] sm:$0xf] %v42_v6  ;;  %v54_v8 = vld [vmem:[#allocation0 + $0x20] sm:$0xf]  ;;  %v60_v9 = vld [vmem:[#allocation0 + $0x28] sm:$0xf] }
  0x83   :  { %85 = vst [vmem:[%s142_s1 + $0xc] sm:$0xf] %v48_v7  ;;  %86 = vst [vmem:[%s142_s1 + $0x10] sm:$0xf] %v54_v8  ;;  %v66_v10 = vld [vmem:[#allocation0 + $0x30] sm:$0xf] }
  0x84   :  { %87 = vst [vmem:[%s142_s1 + $0x14] sm:$0xf] %v60_v9  ;;  %v72_v11 = vld [vmem:[#allocation0 + $0x38] sm:$0xf]  ;;  %88 = vst [vmem:[%s142_s1 + $0x18] sm:$0xf] %v66_v10 }
  0x85   :  { %89 = vst [vmem:[%s142_s1 + $0x1c] sm:$0xf] %v72_v11 }

// kernel: my_new_gcn_forward.2
= control target key start
LH: loop header
LB: loop body
LE: loop exit
PB: predicated region body
PF: predicated region fallthrough
CT: control target
= control target key end

     0   :  { %s1873_s27 = smov 0   ;;  %s2206_s0 = inlined_call_operand.vmem [shape: f32[1,128,128], index: 0, kind: input, shape index: {}]   ;;  %s2207_s1 = inlined_call_operand.vmem [shape: f32[3,128,16], index: 1, kind: input, shape index: {}]   ;;  %s2208_s2 = inlined_call_operand.vmem [shape: f32[16,128], index: 2, kind: input, shape index: {}]   ;;  %s2209_s3 = inlined_call_operand.vmem [shape: f32[1,128], index: 3, kind: input, shape index: {}]   ;;  %s2210_s4 = inlined_call_operand.vmem [shape: f32[128,128], index: 4, kind: input, shape index: {}]   ;;  %s2211_s5 = inlined_call_operand.vmem [shape: f32[1,128], index: 5, kind: input, shape index: {}]   ;;  %s2212_s6 = inlined_call_operand.vmem [shape: f32[16,128], index: 6, kind: input, shape index: {}]   ;;  %s2213_s7 = inlined_call_operand.vmem [shape: f32[1,128], index: 7, kind: input, shape index: {}]   ;;  %s2214_s8 = inlined_call_operand.vmem [shape: f32[3,128,128], index: 8, kind: output, shape index: {}]  }
   0x1 LB: > { %s1272_s28 = sadd.s32 4294967295, %s1826_s27   ;;  %p1276_p0 = scmp.ge.s32.totalorder %s1826_s27, 1  ;;  %s1826_s27 = sphi %s1873_s27, %s18_s27  }
   0x2   : > { %p262_p1 = scmp.lt.s32.totalorder %s1826_s27, 4 }
   0x4   : > { %p263_p2 = pnand %p1276_p0, %p262_p1 }
   0x5   : > { %v338_v0 = vld [vmem:[%s2208_s2] sm:$0xff] (!%p263_p2)  ;;  %v339_v1 = vld [vmem:[%s2208_s2 + $0x8] sm:$0xff] (!%p263_p2)  ;;  %p296_p3 = scmp.lt.s32.totalorder (!%p263_p2), %s1272_s28, 2  ;;  %vm340_vm0 = vcmask (!%p263_p2), 130048   ;;  %v704_v47 = vld [vmem:[%s2210_s4 + $0x10] sm:$0xff] (!%p263_p2) }
   0x6   : > { %266 = sbr.rel (%p263_p2) target bundleno = 1008 (0x3f0), region = 52  ;;  %v1676_v2 = vpack.c.bf16 (!%p263_p2), %v339_v1, %v338_v0  ;;  %v306_v19 = vld [vmem:[%s2206_s0] sm:$0xff] (!%p263_p2)  ;;  %v703_v42 = vld [vmem:[%s2210_s4 + $0x8] sm:$0xff] (!%p263_p2)  ;;  %v705_v48 = vld [vmem:[%s2210_s4 + $0x18] sm:$0xff] (!%p263_p2) }
   0x7   : > { %1624 = vmatprep.mubr.f32.mxu1 (!%p263_p2), %v306_v19  ;;  %v702_v41 = vld [vmem:[%s2210_s4] sm:$0xff] (!%p263_p2)  ;;  %v1995_v49 = vld [vmem:[%s2206_s0 + $0x8] sm:$0xff] (!%p263_p2)  ;;  %v2000_v50 = vld [vmem:[%s2206_s0 + $0x10] sm:$0xff] (!%p263_p2)  ;;  %v1716_v51 = vpack.c.bf16 (!%p263_p2), %v705_v48, %v704_v47 }
   0x8   : > { %1677 = vmatprep.subr.bf16.mxu0 (!%p263_p2), %v1676_v2  ;;  %v1712_v46 = vpack.c.bf16 (!%p263_p2), %v703_v42, %v702_v41  ;;  %v706_v52 = vld [vmem:[%s2210_s4 + $0x20] sm:$0xff] (!%p263_p2)  ;;  %v707_v53 = vld [vmem:[%s2210_s4 + $0x28] sm:$0xff] (!%p263_p2)  ;;  %v2013_v54 = vld [vmem:[%s2206_s0 + $0x18] sm:$0xff] (!%p263_p2) }
   0x9   : > { %1679 = vmatpush3.bf16.msra.mxu0 (!%p263_p2), %v1676_v2  ;;  %v2018_v55 = vld [vmem:[%s2206_s0 + $0x20] sm:$0xff] (!%p263_p2)  ;;  %v1720_v56 = vpack.c.bf16 (!%p263_p2), %v707_v53, %v706_v52  ;;  %v708_v57 = vld [vmem:[%s2210_s4 + $0x30] sm:$0xff] (!%p263_p2)  ;;  %v709_v58 = vld [vmem:[%s2210_s4 + $0x38] sm:$0xff] (!%p263_p2) }
   0xa   : > { %v2031_v59 = vld [vmem:[%s2206_s0 + $0x28] sm:$0xff] (!%p263_p2)  ;;  %v2036_v60 = vld [vmem:[%s2206_s0 + $0x30] sm:$0xff] (!%p263_p2)  ;;  %v1724_v61 = vpack.c.bf16 (!%p263_p2), %v709_v58, %v708_v57  ;;  %v710_v62 = vld [vmem:[%s2210_s4 + $0x40] sm:$0xff] (!%p263_p2) }
   0xb   : > { %v711_v63 = vld [vmem:[%s2210_s4 + $0x48] sm:$0xff] (!%p263_p2)  ;;  %v2049_v0 = vld [vmem:[%s2206_s0 + $0x38] sm:$0xff] (!%p263_p2)  ;;  %v2054_v1 = vld [vmem:[%s2206_s0 + $0x40] sm:$0xff] (!%p263_p2) }
   0xc   : > { %v1728_v2 = vpack.c.bf16 (!%p263_p2), %v711_v63, %v710_v62 }
   0xd   : > { %s2216_s28 = smov (!%p296_p3, %s1272_s28), 2 }
   0xe   : > { %s1318_s11 = sshll.u32 %s2216_s28, 7 }
   0xf   : > { %s1895_s14 = scalar_lea.vmem %s2207_s1, %s1318_s11  ;;  %s2185_s15 = scalar_lea.vmem %s2214_s8, %s1318_s11 }
  0x10   : > { %v1898_v3 = vld [vmem:[%s1895_s14] sm:$0xff]  ;;  %v1901_v4 = vld [vmem:[%s1895_s14 + $0x8] sm:$0xff]  ;;  %v1904_v5 = vld [vmem:[%s1895_s14 + $0x10] sm:$0xff] }
  0x11   : > { %1456 = vmatprep.mubr.msk.f32.mxu0 %vm340_vm0, %v1898_v3  ;;  %v1913_v6 = vld [vmem:[%s1895_s14 + $0x18] sm:$0xff]  ;;  %v1916_v7 = vld [vmem:[%s1895_s14 + $0x20] sm:$0xff]  ;;  %v1923_v8 = vld [vmem:[%s1895_s14 + $0x28] sm:$0xff] }
  0x12   : > { %1457 = vmatmul.mubr.msk.f32.vlgmr.msra.gmra.mrb[0].mxu0 %vm340_vm0, %v1901_v4  ;;  %v1926_v9 = vld [vmem:[%s1895_s14 + $0x30] sm:$0xff]  ;;  %v1933_v10 = vld [vmem:[%s1895_s14 + $0x38] sm:$0xff]  ;;  %v1936_v11 = vld [vmem:[%s1895_s14 + $0x40] sm:$0xff] }
  0x13   : > { %1459 = vmatprep.mubr.msk.f32.mxu0 %vm340_vm0, %v1904_v5  ;;  %v1943_v12 = vld [vmem:[%s1895_s14 + $0x48] sm:$0xff]  ;;  %v1946_v13 = vld [vmem:[%s1895_s14 + $0x50] sm:$0xff]  ;;  %v1953_v14 = vld [vmem:[%s1895_s14 + $0x58] sm:$0xff] }
  0x14   : > { %v1956_v15 = vld [vmem:[%s1895_s14 + $0x60] sm:$0xff]  ;;  %v1963_v16 = vld [vmem:[%s1895_s14 + $0x68] sm:$0xff]  ;;  %v1966_v17 = vld [vmem:[%s1895_s14 + $0x70] sm:$0xff] }
  0x15   : > { %v1973_v18 = vld [vmem:[%s1895_s14 + $0x78] sm:$0xff] }
  0x16   : > { %1460 = vmatmul.mubr.msk.f32.gmra.mrb[2].mxu0 %vm340_vm0, %v1913_v6 }
  0x17   : > { %1462 = vmatprep.mubr.msk.f32.mxu0 %vm340_vm0, %v1916_v7 }
  0x1a   : > { %1463 = vmatmul.mubr.msk.f32.gmra.mrb[4].mxu0 %vm340_vm0, %v1923_v8 }
  0x1b   : > { %1465 = vmatprep.mubr.msk.f32.mxu0 %vm340_vm0, %v1926_v9 }
  0x1e   : > { %1466 = vmatmul.mubr.msk.f32.gmra.mrb[6].mxu0 %vm340_vm0, %v1933_v10 }
  0x1f   : > { %1468 = vmatprep.mubr.msk.f32.mxu0 %vm340_vm0, %v1936_v11 }
  0x22   : > { %1469 = vmatmul.mubr.msk.f32.gmra.mrb[8].mxu0 %vm340_vm0, %v1943_v12 }
  0x23   : > { %1471 = vmatprep.mubr.msk.f32.mxu0 %vm340_vm0, %v1946_v13 }
  0x26   : > { %1472 = vmatmul.mubr.msk.f32.gmra.mrb[10].mxu0 %vm340_vm0, %v1953_v14 }
  0x27   : > { %1474 = vmatprep.mubr.msk.f32.mxu0 %vm340_vm0, %v1956_v15 }
  0x2a   : > { %1475 = vmatmul.mubr.msk.f32.gmra.mrb[12].mxu0 %vm340_vm0, %v1963_v16 }
  0x2b   : > { %1477 = vmatprep.mubr.msk.f32.mxu0 %vm340_vm0, %v1966_v17 }
  0x2e   : > { %1478 = vmatmul.mubr.msk.f32.gmra.mrb[14].mxu0 %vm340_vm0, %v1973_v18 }
  0x2f   : > { %1512 = vmatprep.mubr.f32.mxu0 %v306_v19  ;;  %v712_v19 = vld [vmem:[%s2210_s4 + $0x50] sm:$0xff] }
  0xe5   : > { %v1458_v20 = vpop.f32.mrb[0].mxu0 }
  0xe6   : > { %v455_v21 = vpop.f32.mrb[1].mxu0 }
  0xe7   : > { %v1680_v22 = vpack.c.bf16 %v1458_v20, %v455_v21  ;;  %v713_v20 = vld [vmem:[%s2210_s4 + $0x58] sm:$0xff]  ;;  %v2067_v21 = vld [vmem:[%s2206_s0 + $0x48] sm:$0xff] }
  0xe9   : > { %v1461_v23 = vpop.f32.mrb[2].mxu0  ;;  %1681 = vmatprep.subr.bf16.mxu0 %v1680_v22 }
  0xea   : > { %v465_v24 = vpop.f32.mrb[3].mxu0  ;;  %1683 = vmatpush3.bf16.msra.mxu0 %v1680_v22  ;;  %v2072_v22 = vld [vmem:[%s2206_s0 + $0x50] sm:$0xff] }
  0xeb   : > { %v1684_v25 = vpack.c.bf16 %v1461_v23, %v465_v24  ;;  %v1732_v23 = vpack.c.bf16 %v713_v20, %v712_v19  ;;  %v714_v24 = vld [vmem:[%s2210_s4 + $0x60] sm:$0xff] }
  0xed   : > { %v1464_v26 = vpop.f32.mrb[4].mxu0  ;;  %1685 = vmatprep.subr.bf16.mxu0 %v1684_v25 }
  0xee   : > { %v475_v27 = vpop.f32.mrb[5].mxu0  ;;  %1687 = vmatpush3.bf16.msra.mxu0 %v1684_v25  ;;  %v715_v25 = vld [vmem:[%s2210_s4 + $0x68] sm:$0xff] }
  0xef   : > { %v1688_v28 = vpack.c.bf16 %v1464_v26, %v475_v27  ;;  %v2085_v26 = vld [vmem:[%s2206_s0 + $0x58] sm:$0xff]  ;;  %v2090_v27 = vld [vmem:[%s2206_s0 + $0x60] sm:$0xff] }
  0xf1   : > { %v1467_v29 = vpop.f32.mrb[6].mxu0  ;;  %1689 = vmatprep.subr.bf16.mxu0 %v1688_v28 }
  0xf2   : > { %v485_v30 = vpop.f32.mrb[7].mxu0  ;;  %1691 = vmatpush3.bf16.msra.mxu0 %v1688_v28  ;;  %v1736_v28 = vpack.c.bf16 %v715_v25, %v714_v24 }
  0xf3   : > { %v1692_v31 = vpack.c.bf16 %v1467_v29, %v485_v30  ;;  %v2097_v29 = vld [vmem:[%s2206_s0 + $0x68] sm:$0xff]  ;;  %v2102_v30 = vld [vmem:[%s2206_s0 + $0x70] sm:$0xff] }
  0xf5   : > { %v1470_v32 = vpop.f32.mrb[8].mxu0  ;;  %1693 = vmatprep.subr.bf16.mxu0 %v1692_v31 }
  0xf6   : > { %v495_v33 = vpop.f32.mrb[9].mxu0  ;;  %1695 = vmatpush3.bf16.msra.mxu0 %v1692_v31  ;;  %v2109_v31 = vld [vmem:[%s2206_s0 + $0x78] sm:$0xff] }
  0xf7   : > { %v1696_v34 = vpack.c.bf16 %v1470_v32, %v495_v33  ;;  %v716_v32 = vld [vmem:[%s2210_s4 + $0x70] sm:$0xff]  ;;  %v717_v33 = vld [vmem:[%s2210_s4 + $0x78] sm:$0xff] }
  0xf9   : > { %v1473_v35 = vpop.f32.mrb[10].mxu0  ;;  %1697 = vmatprep.subr.bf16.mxu0 %v1696_v34 }
  0xfa   : > { %v505_v36 = vpop.f32.mrb[11].mxu0  ;;  %1699 = vmatpush3.bf16.msra.mxu0 %v1696_v34  ;;  %v1740_v34 = vpack.c.bf16 %v717_v33, %v716_v32 }
  0xfb   : > { %v1700_v37 = vpack.c.bf16 %v1473_v35, %v505_v36  ;;  %v1297_v35 = vld [vmem:[%s2209_s3] ss:$0 sm:$0xff] }
  0xfd   : > { %v1476_v38 = vpop.f32.mrb[12].mxu0  ;;  %1701 = vmatprep.subr.bf16.mxu0 %v1700_v37 }
  0xfe   : > { %v515_v39 = vpop.f32.mrb[13].mxu0  ;;  %1703 = vmatpush3.bf16.msra.mxu0 %v1700_v37 }
  0xff   : > { %v1704_v40 = vpack.c.bf16 %v1476_v38, %v515_v39 }
 0x101   : > { %v1479_v43 = vpop.f32.mrb[14].mxu0  ;;  %1705 = vmatprep.subr.bf16.mxu0 %v1704_v40 }
 0x102   : > { %v525_v44 = vpop.f32.mrb[15].mxu0  ;;  %1707 = vmatpush3.bf16.msra.mxu0 %v1704_v40 }
 0x103   : > { %v1708_v45 = vpack.c.bf16 %v1479_v43, %v525_v44 }
 0x105   : > { %1709 = vmatprep.subr.bf16.mxu0 %v1708_v45 }
 0x106   : > { %1711 = vmatpush3.bf16.msra.mxu0 %v1708_v45 }
 0x107   : > { %1713 = vmatprep.subr.bf16.mxu0 %v1712_v46 }
 0x109   : > { %1513 = vmatmul.mubr.f32.vlgmr.msra.gmra.mrb[16].mxu0 %v1995_v49 }
 0x10a   : > { %1515 = vmatprep.mubr.f32.mxu0 %v2000_v50  ;;  %1715 = vmatpush3.bf16.msra.mxu0 %v1712_v46 }
 0x10b   : > { %1717 = vmatprep.subr.bf16.mxu0 %v1716_v51 }
 0x10d   : > { %1516 = vmatmul.mubr.f32.gmra.mrb[18].mxu0 %v2013_v54 }
 0x10e   : > { %1518 = vmatprep.mubr.f32.mxu0 %v2018_v55  ;;  %1719 = vmatpush3.bf16.msra.mxu0 %v1716_v51 }
 0x10f   : > { %1721 = vmatprep.subr.bf16.mxu0 %v1720_v56 }
 0x111   : > { %1519 = vmatmul.mubr.f32.gmra.mrb[20].mxu0 %v2031_v59 }
 0x112   : > { %1521 = vmatprep.mubr.f32.mxu0 %v2036_v60  ;;  %1723 = vmatpush3.bf16.msra.mxu0 %v1720_v56 }
 0x113   : > { %1725 = vmatprep.subr.bf16.mxu0 %v1724_v61 }
 0x115   : > { %1522 = vmatmul.mubr.f32.gmra.mrb[22].mxu0 %v2049_v0 }
 0x116   : > { %1524 = vmatprep.mubr.f32.mxu0 %v2054_v1  ;;  %1727 = vmatpush3.bf16.msra.mxu0 %v1724_v61 }
 0x117   : > { %1729 = vmatprep.subr.bf16.mxu0 %v1728_v2 }
 0x119   : > { %1525 = vmatmul.mubr.f32.gmra.mrb[24].mxu0 %v2067_v21 }
 0x11a   : > { %1527 = vmatprep.mubr.f32.mxu0 %v2072_v22  ;;  %1731 = vmatpush3.bf16.msra.mxu0 %v1728_v2 }
 0x11b   : > { %1733 = vmatprep.subr.bf16.mxu0 %v1732_v23 }
 0x11d   : > { %1528 = vmatmul.mubr.f32.gmra.mrb[26].mxu0 %v2085_v26 }
 0x11e   : > { %1530 = vmatprep.mubr.f32.mxu0 %v2090_v27  ;;  %1735 = vmatpush3.bf16.msra.mxu0 %v1732_v23 }
 0x11f   : > { %1737 = vmatprep.subr.bf16.mxu0 %v1736_v28 }
 0x121   : > { %1531 = vmatmul.mubr.f32.gmra.mrb[28].mxu0 %v2097_v29 }
 0x122   : > { %1533 = vmatprep.mubr.f32.mxu0 %v2102_v30  ;;  %1739 = vmatpush3.bf16.msra.mxu0 %v1736_v28 }
 0x123   : > { %1741 = vmatprep.subr.bf16.mxu0 %v1740_v34 }
 0x125   : > { %1534 = vmatmul.mubr.f32.gmra.mrb[30].mxu0 %v2109_v31 }
 0x126   : > { %1743 = vmatpush3.bf16.msra.mxu0 %v1740_v34 }
 0x1dc   : > { %v1514_v36 = vpop.f32.mrb[16].mxu0 }
 0x1dd   : > { %v613_v37 = vadd.f32 %v1514_v36, %v1297_v35  ;;  %v607_v38 = vpop.f32.mrb[17].mxu0 }
 0x1de   : > { %v608_v39 = vadd.f32 %v1297_v35, %v607_v38 }
 0x1df   : > { %v687_v42 = vmax.f32 %v613_v37, 0.0 }
 0x1e0   : > { %v686_v40 = vmax.f32 %v608_v39, 0.0  ;;  %v1517_v41 = vpop.f32.mrb[18].mxu0 }
 0x1e1   : > { %v623_v43 = vadd.f32 %v1517_v41, %v1297_v35  ;;  %v617_v44 = vpop.f32.mrb[19].mxu0 }
 0x1e2   : > { %v618_v45 = vadd.f32 %v1297_v35, %v617_v44  ;;  %1568 = vmatprep.mubr.f32.mxu0 %v686_v40 }
 0x1e3   : > { %1569 = vmatmul.mubr.f32.vlgmr.msra.gmra.mrb[32].mxu0 %v687_v42  ;;  %v689_v48 = vmax.f32 %v623_v43, 0.0 }
 0x1e4   : > { %v688_v46 = vmax.f32 %v618_v45, 0.0  ;;  %v1520_v47 = vpop.f32.mrb[20].mxu0 }
 0x1e5   : > { %v633_v51 = vadd.f32 %v1520_v47, %v1297_v35  ;;  %v627_v52 = vpop.f32.mrb[21].mxu0 }
 0x1e6   : > { %v628_v53 = vadd.f32 %v1297_v35, %v627_v52  ;;  %1571 = vmatprep.mubr.f32.mxu0 %v688_v46 }
 0x1e7   : > { %1572 = vmatmul.mubr.f32.gmra.mrb[34].mxu0 %v689_v48  ;;  %v691_v58 = vmax.f32 %v633_v51, 0.0 }
 0x1e8   : > { %v690_v56 = vmax.f32 %v628_v53, 0.0  ;;  %v1523_v57 = vpop.f32.mrb[22].mxu0 }
 0x1e9   : > { %v643_v61 = vadd.f32 %v1523_v57, %v1297_v35  ;;  %v637_v62 = vpop.f32.mrb[23].mxu0 }
 0x1ea   : > { %v638_v63 = vadd.f32 %v1297_v35, %v637_v62  ;;  %1574 = vmatprep.mubr.f32.mxu0 %v690_v56 }
 0x1eb   : > { %1575 = vmatmul.mubr.f32.gmra.mrb[36].mxu0 %v691_v58  ;;  %v693_v20 = vmax.f32 %v643_v61, 0.0 }
 0x1ec   : > { %v692_v2 = vmax.f32 %v638_v63, 0.0  ;;  %v1526_v19 = vpop.f32.mrb[24].mxu0 }
 0x1ed   : > { %v653_v23 = vadd.f32 %v1526_v19, %v1297_v35  ;;  %v647_v24 = vpop.f32.mrb[25].mxu0 }
 0x1ee   : > { %v648_v25 = vadd.f32 %v1297_v35, %v647_v24  ;;  %1577 = vmatprep.mubr.f32.mxu0 %v692_v2 }
 0x1ef   : > { %1578 = vmatmul.mubr.f32.gmra.mrb[38].mxu0 %v693_v20  ;;  %v695_v33 = vmax.f32 %v653_v23, 0.0 }
 0x1f0   : > { %v694_v28 = vmax.f32 %v648_v25, 0.0  ;;  %v1529_v32 = vpop.f32.mrb[26].mxu0 }
 0x1f1   : > { %v663_v34 = vadd.f32 %v1529_v32, %v1297_v35  ;;  %v657_v36 = vpop.f32.mrb[27].mxu0 }
 0x1f2   : > { %v658_v37 = vadd.f32 %v1297_v35, %v657_v36  ;;  %1580 = vmatprep.mubr.f32.mxu0 %v694_v28 }
 0x1f3   : > { %1581 = vmatmul.mubr.f32.gmra.mrb[40].mxu0 %v695_v33  ;;  %v697_v40 = vmax.f32 %v663_v34, 0.0 }
 0x1f4   : > { %v696_v38 = vmax.f32 %v658_v37, 0.0  ;;  %v1532_v39 = vpop.f32.mrb[28].mxu0 }
 0x1f5   : > { %v673_v41 = vadd.f32 %v1532_v39, %v1297_v35  ;;  %v667_v42 = vpop.f32.mrb[29].mxu0 }
 0x1f6   : > { %v668_v43 = vadd.f32 %v1297_v35, %v667_v42  ;;  %1583 = vmatprep.mubr.f32.mxu0 %v696_v38 }
 0x1f7   : > { %1584 = vmatmul.mubr.f32.gmra.mrb[42].mxu0 %v697_v40  ;;  %v699_v46 = vmax.f32 %v673_v41, 0.0  ;;  %v1015_v40 = vld [vmem:[%s2212_s6] sm:$0xff]  ;;  %v1016_v41 = vld [vmem:[%s2212_s6 + $0x8] sm:$0xff] }
 0x1f8   : > { %v698_v44 = vmax.f32 %v668_v43, 0.0  ;;  %v1535_v45 = vpop.f32.mrb[30].mxu0 }
 0x1f9   : > { %v683_v47 = vadd.f32 %v1535_v45, %v1297_v35  ;;  %v677_v48 = vpop.f32.mrb[31].mxu0  ;;  %v1776_v45 = vpack.c.bf16 %v1016_v41, %v1015_v40 }
 0x1fa   : > { %v678_v51 = vadd.f32 %v1297_v35, %v677_v48  ;;  %1586 = vmatprep.mubr.f32.mxu0 %v698_v44 }
 0x1fb   : > { %1587 = vmatmul.mubr.f32.gmra.mrb[44].mxu0 %v699_v46  ;;  %v701_v53 = vmax.f32 %v683_v47, 0.0 }
 0x1fc   : > { %v700_v52 = vmax.f32 %v678_v51, 0.0 }
 0x1fe   : > { %1589 = vmatprep.mubr.f32.mxu0 %v700_v52 }
 0x1ff   : > { %1590 = vmatmul.mubr.f32.gmra.mrb[46].mxu0 %v701_v53 }
 0x2b6   : > { %v1570_v56 = vpop.f32.mrb[32].mxu0 }
 0x2b7   : > { %v784_v57 = vpop.f32.mrb[33].mxu0 }
 0x2b8   : > { %v1744_v58 = vpack.c.bf16 %v1570_v56, %v784_v57 }
 0x2ba   : > { %v1573_v61 = vpop.f32.mrb[34].mxu0  ;;  %1745 = vmatprep.subr.bf16.mxu1 %v1744_v58 }
 0x2bb   : > { %v794_v62 = vpop.f32.mrb[35].mxu0  ;;  %1747 = vmatpush3.bf16.msra.mxu1 %v1744_v58 }
 0x2bc   : > { %v1748_v63 = vpack.c.bf16 %v1573_v61, %v794_v62 }
 0x2be   : > { %v1576_v2 = vpop.f32.mrb[36].mxu0  ;;  %1749 = vmatprep.subr.bf16.mxu1 %v1748_v63 }
 0x2bf   : > { %v804_v19 = vpop.f32.mrb[37].mxu0  ;;  %1751 = vmatpush3.bf16.msra.mxu1 %v1748_v63 }
 0x2c0   : > { %v1752_v20 = vpack.c.bf16 %v1576_v2, %v804_v19 }
 0x2c2   : > { %v1579_v35 = vpop.f32.mrb[38].mxu0  ;;  %1753 = vmatprep.subr.bf16.mxu1 %v1752_v20 }
 0x2c3   : > { %v814_v23 = vpop.f32.mrb[39].mxu0  ;;  %1755 = vmatpush3.bf16.msra.mxu1 %v1752_v20 }
 0x2c4   : > { %v1756_v24 = vpack.c.bf16 %v1579_v35, %v814_v23 }
 0x2c6   : > { %v1582_v25 = vpop.f32.mrb[40].mxu0  ;;  %1757 = vmatprep.subr.bf16.mxu1 %v1756_v24 }
 0x2c7   : > { %v824_v28 = vpop.f32.mrb[41].mxu0  ;;  %1759 = vmatpush3.bf16.msra.mxu1 %v1756_v24 }
 0x2c8   : > { %v1760_v32 = vpack.c.bf16 %v1582_v25, %v824_v28 }
 0x2ca   : > { %v1585_v33 = vpop.f32.mrb[42].mxu0  ;;  %1761 = vmatprep.subr.bf16.mxu1 %v1760_v32 }
 0x2cb   : > { %v834_v34 = vpop.f32.mrb[43].mxu0  ;;  %1763 = vmatpush3.bf16.msra.mxu1 %v1760_v32 }
 0x2cc   : > { %v1764_v36 = vpack.c.bf16 %v1585_v33, %v834_v34 }
 0x2ce   : > { %v1588_v37 = vpop.f32.mrb[44].mxu0  ;;  %1765 = vmatprep.subr.bf16.mxu1 %v1764_v36 }
 0x2cf   : > { %v844_v38 = vpop.f32.mrb[45].mxu0  ;;  %1767 = vmatpush3.bf16.msra.mxu1 %v1764_v36 }
 0x2d0   : > { %v1768_v39 = vpack.c.bf16 %v1588_v37, %v844_v38 }
 0x2d2   : > { %v1591_v42 = vpop.f32.mrb[46].mxu0  ;;  %1769 = vmatprep.subr.bf16.mxu1 %v1768_v39 }
 0x2d3   : > { %v854_v43 = vpop.f32.mrb[47].mxu0  ;;  %1771 = vmatpush3.bf16.msra.mxu1 %v1768_v39 }
 0x2d4   : > { %v1772_v44 = vpack.c.bf16 %v1591_v42, %v854_v43 }
 0x2d6   : > { %1773 = vmatprep.subr.bf16.mxu1 %v1772_v44 }
 0x2d7   : > { %1775 = vmatpush3.bf16.msra.mxu1 %v1772_v44 }
 0x2d8   : > { %1777 = vmatprep.subr.bf16.mxu1 %v1776_v45 }
 0x2da   : > { %1625 = vmatmul.mubr.f32.vlgmr.msra.gmra.mrb[0].mxu1 %v1995_v49 }
 0x2db   : > { %1779 = vmatpush3.bf16.msra.mxu1 %v1776_v45  ;;  %1627 = vmatprep.mubr.f32.mxu1 %v2000_v50 }
 0x2de   : > { %1628 = vmatmul.mubr.f32.gmra.mrb[2].mxu1 %v2013_v54 }
 0x2df   : > { %1630 = vmatprep.mubr.f32.mxu1 %v2018_v55 }
 0x2e2   : > { %1631 = vmatmul.mubr.f32.gmra.mrb[4].mxu1 %v2031_v59 }
 0x2e3   : > { %1633 = vmatprep.mubr.f32.mxu1 %v2036_v60 }
 0x2e6   : > { %1634 = vmatmul.mubr.f32.gmra.mrb[6].mxu1 %v2049_v0 }
 0x2e7   : > { %1636 = vmatprep.mubr.f32.mxu1 %v2054_v1 }
 0x2ea   : > { %1637 = vmatmul.mubr.f32.gmra.mrb[8].mxu1 %v2067_v21 }
 0x2eb   : > { %1639 = vmatprep.mubr.f32.mxu1 %v2072_v22 }
 0x2ee   : > { %1640 = vmatmul.mubr.f32.gmra.mrb[10].mxu1 %v2085_v26 }
 0x2ef   : > { %1642 = vmatprep.mubr.f32.mxu1 %v2090_v27 }
 0x2f2   : > { %1643 = vmatmul.mubr.f32.gmra.mrb[12].mxu1 %v2097_v29 }
 0x2f3   : > { %1645 = vmatprep.mubr.f32.mxu1 %v2102_v30 }
 0x2f6   : > { %1646 = vmatmul.mubr.f32.gmra.mrb[14].mxu1 %v2109_v31 }
 0x2f7   : > { %1652 = vmatprep.mubr.msk.f32.mxu1 %vm340_vm0, %v1898_v3  ;;  %v1298_v3 = vld [vmem:[%s2211_s5] ss:$0 sm:$0xff] }
 0x2fa   : > { %1653 = vmatmul.mubr.msk.f32.vlgmr.msra.gmra.mrb[0].mxu1 %vm340_vm0, %v1901_v4 }
 0x2fb   : > { %1655 = vmatprep.mubr.msk.f32.mxu1 %vm340_vm0, %v1904_v5  ;;  %v1315_v5 = vld [vmem:[%s2213_s7] ss:$0 sm:$0xff] }
 0x2fe   : > { %1656 = vmatmul.mubr.msk.f32.gmra.mrb[2].mxu1 %vm340_vm0, %v1913_v6 }
 0x2ff   : > { %1658 = vmatprep.mubr.msk.f32.mxu1 %vm340_vm0, %v1916_v7 }
 0x302   : > { %1659 = vmatmul.mubr.msk.f32.gmra.mrb[4].mxu1 %vm340_vm0, %v1923_v8 }
 0x303   : > { %1661 = vmatprep.mubr.msk.f32.mxu1 %vm340_vm0, %v1926_v9 }
 0x306   : > { %1662 = vmatmul.mubr.msk.f32.gmra.mrb[6].mxu1 %vm340_vm0, %v1933_v10 }
 0x307   : > { %1664 = vmatprep.mubr.msk.f32.mxu1 %vm340_vm0, %v1936_v11 }
 0x30a   : > { %1665 = vmatmul.mubr.msk.f32.gmra.mrb[8].mxu1 %vm340_vm0, %v1943_v12 }
 0x30b   : > { %1667 = vmatprep.mubr.msk.f32.mxu1 %vm340_vm0, %v1946_v13 }
 0x30e   : > { %1668 = vmatmul.mubr.msk.f32.gmra.mrb[10].mxu1 %vm340_vm0, %v1953_v14 }
 0x30f   : > { %1670 = vmatprep.mubr.msk.f32.mxu1 %vm340_vm0, %v1956_v15 }
 0x312   : > { %1671 = vmatmul.mubr.msk.f32.gmra.mrb[12].mxu1 %vm340_vm0, %v1963_v16 }
 0x313   : > { %1673 = vmatprep.mubr.msk.f32.mxu1 %vm340_vm0, %v1966_v17 }
 0x316   : > { %1674 = vmatmul.mubr.msk.f32.gmra.mrb[14].mxu1 %vm340_vm0, %v1973_v18 }
 0x3cd   : > { %v1654_v4 = vpop.f32.mrb[0].mxu1 }
 0x3ce   : > { %v1780_v6 = vadd.f32 %v1654_v4, %v1298_v3  ;;  %v1083_v7 = vpop.f32.mrb[1].mxu1 }
 0x3cf   : > { %v1781_v8 = vadd.f32 %v1298_v3, %v1083_v7 }
 0x3d0   : > { %v1186_v9 = vadd.f32 %v1780_v6, %v1315_v5 }
 0x3d1   : > { %v1185_v10 = vadd.f32 %v1781_v8, %v1315_v5  ;;  %v1657_v11 = vpop.f32.mrb[2].mxu1 }
 0x3d2   : > { %1202 = vst [vmem:[%s2185_s15 + $0x8] sm:$0xff] %v1186_v9  ;;  %v1782_v12 = vadd.f32 %v1657_v11, %v1298_v3  ;;  %v1093_v13 = vpop.f32.mrb[3].mxu1 }
 0x3d3   : > { %1201 = vst [vmem:[%s2185_s15] sm:$0xff] %v1185_v10  ;;  %v1783_v14 = vadd.f32 %v1298_v3, %v1093_v13 }
 0x3d4   : > { %v1188_v15 = vadd.f32 %v1782_v12, %v1315_v5 }
 0x3d5   : > { %v1187_v16 = vadd.f32 %v1783_v14, %v1315_v5  ;;  %v1660_v17 = vpop.f32.mrb[4].mxu1 }
 0x3d6   : > { %1204 = vst [vmem:[%s2185_s15 + $0x18] sm:$0xff] %v1188_v15  ;;  %v1784_v18 = vadd.f32 %v1660_v17, %v1298_v3  ;;  %v1103_v49 = vpop.f32.mrb[5].mxu1 }
 0x3d7   : > { %1203 = vst [vmem:[%s2185_s15 + $0x10] sm:$0xff] %v1187_v16  ;;  %v1785_v50 = vadd.f32 %v1298_v3, %v1103_v49 }
 0x3d8   : > { %v1190_v54 = vadd.f32 %v1784_v18, %v1315_v5 }
 0x3d9   : > { %v1189_v55 = vadd.f32 %v1785_v50, %v1315_v5  ;;  %v1663_v59 = vpop.f32.mrb[6].mxu1 }
 0x3da   : > { %1206 = vst [vmem:[%s2185_s15 + $0x28] sm:$0xff] %v1190_v54  ;;  %v1786_v60 = vadd.f32 %v1663_v59, %v1298_v3  ;;  %v1113_v0 = vpop.f32.mrb[7].mxu1 }
 0x3db   : > { %1205 = vst [vmem:[%s2185_s15 + $0x20] sm:$0xff] %v1189_v55  ;;  %v1787_v1 = vadd.f32 %v1298_v3, %v1113_v0 }
 0x3dc   : > { %v1192_v21 = vadd.f32 %v1786_v60, %v1315_v5 }
 0x3dd   : > { %v1191_v22 = vadd.f32 %v1787_v1, %v1315_v5  ;;  %v1666_v26 = vpop.f32.mrb[8].mxu1 }
 0x3de   : > { %1208 = vst [vmem:[%s2185_s15 + $0x38] sm:$0xff] %v1192_v21  ;;  %v1788_v27 = vadd.f32 %v1666_v26, %v1298_v3  ;;  %v1123_v29 = vpop.f32.mrb[9].mxu1 }
 0x3df   : > { %1207 = vst [vmem:[%s2185_s15 + $0x30] sm:$0xff] %v1191_v22  ;;  %v1789_v30 = vadd.f32 %v1298_v3, %v1123_v29 }
 0x3e0   : > { %v1194_v31 = vadd.f32 %v1788_v27, %v1315_v5 }
 0x3e1   : > { %v1193_v46 = vadd.f32 %v1789_v30, %v1315_v5  ;;  %v1669_v47 = vpop.f32.mrb[10].mxu1 }
 0x3e2   : > { %1210 = vst [vmem:[%s2185_s15 + $0x48] sm:$0xff] %v1194_v31  ;;  %v1790_v48 = vadd.f32 %v1669_v47, %v1298_v3  ;;  %v1133_v51 = vpop.f32.mrb[11].mxu1 }
 0x3e3   : > { %1209 = vst [vmem:[%s2185_s15 + $0x40] sm:$0xff] %v1193_v46  ;;  %v1791_v52 = vadd.f32 %v1298_v3, %v1133_v51 }
 0x3e4   : > { %v1196_v53 = vadd.f32 %v1790_v48, %v1315_v5 }
 0x3e5   : > { %v1195_v56 = vadd.f32 %v1791_v52, %v1315_v5  ;;  %v1672_v57 = vpop.f32.mrb[12].mxu1 }
 0x3e6   : > { %1212 = vst [vmem:[%s2185_s15 + $0x58] sm:$0xff] %v1196_v53  ;;  %v1792_v58 = vadd.f32 %v1672_v57, %v1298_v3  ;;  %v1143_v61 = vpop.f32.mrb[13].mxu1 }
 0x3e7   : > { %1211 = vst [vmem:[%s2185_s15 + $0x50] sm:$0xff] %v1195_v56  ;;  %v1793_v62 = vadd.f32 %v1298_v3, %v1143_v61 }
 0x3e8   : > { %v1198_v63 = vadd.f32 %v1792_v58, %v1315_v5 }
 0x3e9   : > { %v1197_v2 = vadd.f32 %v1793_v62, %v1315_v5  ;;  %v1675_v19 = vpop.f32.mrb[14].mxu1 }
 0x3ea   : > { %1214 = vst [vmem:[%s2185_s15 + $0x68] sm:$0xff] %v1198_v63  ;;  %v1794_v20 = vadd.f32 %v1675_v19, %v1298_v3  ;;  %v1153_v35 = vpop.f32.mrb[15].mxu1 }
 0x3eb   : > { %1213 = vst [vmem:[%s2185_s15 + $0x60] sm:$0xff] %v1197_v2  ;;  %v1795_v23 = vadd.f32 %v1298_v3, %v1153_v35 }
 0x3ec   : > { %v1200_v24 = vadd.f32 %v1794_v20, %v1315_v5 }
 0x3ed   : > { %v1199_v25 = vadd.f32 %v1795_v23, %v1315_v5 }
 0x3ee   : > { %1216 = vst [vmem:[%s2185_s15 + $0x78] sm:$0xff] %v1200_v24 }
 0x3ef   : > { %1215 = vst [vmem:[%s2185_s15 + $0x70] sm:$0xff] %v1199_v25 }
 0x3f0 PF: > { %s18_s27 = sadd.s32 1, %s1826_s27  }
 0x3f1   : > { %p15_p4 = scmp.ge.s32.totalorder %s18_s27, 5  }
 0x3f3   :  { %17 = sbr.rel (!%p15_p4) target bundleno = 1 (0x1), region = 82 }

// kernel: my_new_gcn_forward.3
= control target key start
LH: loop header
LB: loop body
LE: loop exit
PB: predicated region body
PF: predicated region fallthrough
CT: control target
= control target key end

     0   :  { %s1908_s27 = smov 0   ;;  %s2212_s0 = inlined_call_operand.vmem [shape: f32[3,128,128], index: 0, kind: input, shape index: {}]   ;;  %s2213_s1 = inlined_call_operand.vmem [shape: f32[3,128,16], index: 1, kind: input, shape index: {}]   ;;  %s2214_s2 = inlined_call_operand.vmem [shape: f32[16,128], index: 2, kind: input, shape index: {}]   ;;  %s2215_s3 = inlined_call_operand.vmem [shape: f32[1,128], index: 3, kind: input, shape index: {}]   ;;  %s2216_s4 = inlined_call_operand.vmem [shape: f32[128,128], index: 4, kind: input, shape index: {}]   ;;  %s2217_s5 = inlined_call_operand.vmem [shape: f32[1,128], index: 5, kind: input, shape index: {}]   ;;  %s2218_s6 = inlined_call_operand.vmem [shape: f32[16,128], index: 6, kind: input, shape index: {}]   ;;  %s2219_s7 = inlined_call_operand.vmem [shape: f32[1,128], index: 7, kind: input, shape index: {}]   ;;  %s2220_s8 = inlined_call_operand.vmem [shape: f32[3,128,128], index: 8, kind: output, shape index: {}]  }
   0x1 LB: > { %s1304_s28 = sadd.s32 4294967295, %s1861_s27   ;;  %p1308_p0 = scmp.ge.s32.totalorder %s1861_s27, 1  ;;  %s1861_s27 = sphi %s1908_s27, %s18_s27  }
   0x2   : > { %p272_p1 = scmp.lt.s32.totalorder %s1861_s27, 4 }
   0x4   : > { %p273_p2 = pnand %p1308_p0, %p272_p1 }
   0x5   : > { %v358_v0 = vld [vmem:[%s2214_s2] sm:$0xff] (!%p273_p2)  ;;  %v359_v1 = vld [vmem:[%s2214_s2 + $0x8] sm:$0xff] (!%p273_p2)  ;;  %p311_p3 = scmp.lt.s32.totalorder (!%p273_p2), %s1304_s28, 2  ;;  %vm360_vm0 = vcmask (!%p273_p2), 130048   ;;  %v724_v47 = vld [vmem:[%s2216_s4 + $0x10] sm:$0xff] (!%p273_p2) }
   0x6   : > { %276 = sbr.rel (%p273_p2) target bundleno = 1008 (0x3f0), region = 52  ;;  %v1711_v2 = vpack.c.bf16 (!%p273_p2), %v359_v1, %v358_v0  ;;  %v722_v41 = vld [vmem:[%s2216_s4] sm:$0xff] (!%p273_p2)  ;;  %v723_v42 = vld [vmem:[%s2216_s4 + $0x8] sm:$0xff] (!%p273_p2)  ;;  %v725_v48 = vld [vmem:[%s2216_s4 + $0x18] sm:$0xff] (!%p273_p2) }
   0x7   : > { %v1747_v46 = vpack.c.bf16 (!%p273_p2), %v723_v42, %v722_v41  ;;  %v1751_v51 = vpack.c.bf16 (!%p273_p2), %v725_v48, %v724_v47  ;;  %v726_v52 = vld [vmem:[%s2216_s4 + $0x20] sm:$0xff] (!%p273_p2)  ;;  %v727_v53 = vld [vmem:[%s2216_s4 + $0x28] sm:$0xff] (!%p273_p2)  ;;  %v728_v57 = vld [vmem:[%s2216_s4 + $0x30] sm:$0xff] (!%p273_p2) }
   0x8   : > { %1712 = vmatprep.subr.bf16.mxu0 (!%p273_p2), %v1711_v2  ;;  %v1755_v56 = vpack.c.bf16 (!%p273_p2), %v727_v53, %v726_v52  ;;  %v729_v58 = vld [vmem:[%s2216_s4 + $0x38] sm:$0xff] (!%p273_p2)  ;;  %v730_v62 = vld [vmem:[%s2216_s4 + $0x40] sm:$0xff] (!%p273_p2)  ;;  %v731_v63 = vld [vmem:[%s2216_s4 + $0x48] sm:$0xff] (!%p273_p2) }
   0x9   : > { %1714 = vmatpush3.bf16.msra.mxu0 (!%p273_p2), %v1711_v2  ;;  %v1759_v61 = vpack.c.bf16 (!%p273_p2), %v729_v58, %v728_v57  ;;  %v1763_v2 = vpack.c.bf16 (!%p273_p2), %v731_v63, %v730_v62 }
   0xd   : > { %s2222_s28 = smov (!%p311_p3, %s1304_s28), 2 }
   0xe   : > { %s1922_s11 = sshll.u32 %s2222_s28, 7 }
   0xf   : > { %s1928_s14 = scalar_lea.vmem %s2213_s1, %s1922_s11  ;;  %s2014_s17 = scalar_lea.vmem %s2212_s0, %s1922_s11 }
  0x10   : > { %v1931_v3 = vld [vmem:[%s1928_s14] sm:$0xff]  ;;  %v1934_v4 = vld [vmem:[%s1928_s14 + $0x8] sm:$0xff]  ;;  %v1937_v5 = vld [vmem:[%s1928_s14 + $0x10] sm:$0xff]  ;;  %s2191_s23 = scalar_lea.vmem %s2220_s8, %s1922_s11 }
  0x11   : > { %1491 = vmatprep.mubr.msk.f32.mxu0 %vm360_vm0, %v1931_v3  ;;  %v1946_v6 = vld [vmem:[%s1928_s14 + $0x18] sm:$0xff]  ;;  %v1949_v7 = vld [vmem:[%s1928_s14 + $0x20] sm:$0xff]  ;;  %v1956_v8 = vld [vmem:[%s1928_s14 + $0x28] sm:$0xff] }
  0x12   : > { %1492 = vmatmul.mubr.msk.f32.vlgmr.msra.gmra.mrb[0].mxu0 %vm360_vm0, %v1934_v4  ;;  %v1959_v9 = vld [vmem:[%s1928_s14 + $0x30] sm:$0xff]  ;;  %v1966_v10 = vld [vmem:[%s1928_s14 + $0x38] sm:$0xff]  ;;  %v1969_v11 = vld [vmem:[%s1928_s14 + $0x40] sm:$0xff] }
  0x13   : > { %1494 = vmatprep.mubr.msk.f32.mxu0 %vm360_vm0, %v1937_v5  ;;  %v1976_v12 = vld [vmem:[%s1928_s14 + $0x48] sm:$0xff]  ;;  %v1979_v13 = vld [vmem:[%s1928_s14 + $0x50] sm:$0xff]  ;;  %v1986_v14 = vld [vmem:[%s1928_s14 + $0x58] sm:$0xff] }
  0x14   : > { %v1989_v15 = vld [vmem:[%s1928_s14 + $0x60] sm:$0xff]  ;;  %v1996_v16 = vld [vmem:[%s1928_s14 + $0x68] sm:$0xff]  ;;  %v1999_v17 = vld [vmem:[%s1928_s14 + $0x70] sm:$0xff] }
  0x15   : > { %v2006_v18 = vld [vmem:[%s1928_s14 + $0x78] sm:$0xff]  ;;  %v326_v19 = vld [vmem:[%s2014_s17] sm:$0xff]  ;;  %v2030_v49 = vld [vmem:[%s2014_s17 + $0x8] sm:$0xff] }
  0x16   : > { %1495 = vmatmul.mubr.msk.f32.gmra.mrb[2].mxu0 %vm360_vm0, %v1946_v6  ;;  %1659 = vmatprep.mubr.f32.mxu1 %v326_v19  ;;  %v2033_v50 = vld [vmem:[%s2014_s17 + $0x10] sm:$0xff]  ;;  %v2044_v54 = vld [vmem:[%s2014_s17 + $0x18] sm:$0xff]  ;;  %v2047_v55 = vld [vmem:[%s2014_s17 + $0x20] sm:$0xff] }
  0x17   : > { %1497 = vmatprep.mubr.msk.f32.mxu0 %vm360_vm0, %v1949_v7  ;;  %v2058_v59 = vld [vmem:[%s2014_s17 + $0x28] sm:$0xff]  ;;  %v2061_v60 = vld [vmem:[%s2014_s17 + $0x30] sm:$0xff]  ;;  %v2072_v0 = vld [vmem:[%s2014_s17 + $0x38] sm:$0xff] }
  0x18   : > { %v2075_v1 = vld [vmem:[%s2014_s17 + $0x40] sm:$0xff] }
  0x1a   : > { %1498 = vmatmul.mubr.msk.f32.gmra.mrb[4].mxu0 %vm360_vm0, %v1956_v8 }
  0x1b   : > { %1500 = vmatprep.mubr.msk.f32.mxu0 %vm360_vm0, %v1959_v9 }
  0x1e   : > { %1501 = vmatmul.mubr.msk.f32.gmra.mrb[6].mxu0 %vm360_vm0, %v1966_v10 }
  0x1f   : > { %1503 = vmatprep.mubr.msk.f32.mxu0 %vm360_vm0, %v1969_v11 }
  0x22   : > { %1504 = vmatmul.mubr.msk.f32.gmra.mrb[8].mxu0 %vm360_vm0, %v1976_v12 }
  0x23   : > { %1506 = vmatprep.mubr.msk.f32.mxu0 %vm360_vm0, %v1979_v13 }
  0x26   : > { %1507 = vmatmul.mubr.msk.f32.gmra.mrb[10].mxu0 %vm360_vm0, %v1986_v14 }
  0x27   : > { %1509 = vmatprep.mubr.msk.f32.mxu0 %vm360_vm0, %v1989_v15 }
  0x2a   : > { %1510 = vmatmul.mubr.msk.f32.gmra.mrb[12].mxu0 %vm360_vm0, %v1996_v16 }
  0x2b   : > { %1512 = vmatprep.mubr.msk.f32.mxu0 %vm360_vm0, %v1999_v17 }
  0x2e   : > { %1513 = vmatmul.mubr.msk.f32.gmra.mrb[14].mxu0 %vm360_vm0, %v2006_v18 }
  0x2f   : > { %1547 = vmatprep.mubr.f32.mxu0 %v326_v19  ;;  %v732_v19 = vld [vmem:[%s2216_s4 + $0x50] sm:$0xff] }
  0xe5   : > { %v1493_v20 = vpop.f32.mrb[0].mxu0 }
  0xe6   : > { %v475_v21 = vpop.f32.mrb[1].mxu0 }
  0xe7   : > { %v1715_v22 = vpack.c.bf16 %v1493_v20, %v475_v21  ;;  %v733_v20 = vld [vmem:[%s2216_s4 + $0x58] sm:$0xff]  ;;  %v2086_v21 = vld [vmem:[%s2014_s17 + $0x48] sm:$0xff] }
  0xe9   : > { %v1496_v23 = vpop.f32.mrb[2].mxu0  ;;  %1716 = vmatprep.subr.bf16.mxu0 %v1715_v22 }
  0xea   : > { %v485_v24 = vpop.f32.mrb[3].mxu0  ;;  %1718 = vmatpush3.bf16.msra.mxu0 %v1715_v22  ;;  %v2089_v22 = vld [vmem:[%s2014_s17 + $0x50] sm:$0xff] }
  0xeb   : > { %v1719_v25 = vpack.c.bf16 %v1496_v23, %v485_v24  ;;  %v1767_v23 = vpack.c.bf16 %v733_v20, %v732_v19  ;;  %v734_v24 = vld [vmem:[%s2216_s4 + $0x60] sm:$0xff] }
  0xed   : > { %v1499_v26 = vpop.f32.mrb[4].mxu0  ;;  %1720 = vmatprep.subr.bf16.mxu0 %v1719_v25 }
  0xee   : > { %v495_v27 = vpop.f32.mrb[5].mxu0  ;;  %1722 = vmatpush3.bf16.msra.mxu0 %v1719_v25  ;;  %v735_v25 = vld [vmem:[%s2216_s4 + $0x68] sm:$0xff] }
  0xef   : > { %v1723_v28 = vpack.c.bf16 %v1499_v26, %v495_v27  ;;  %v2100_v26 = vld [vmem:[%s2014_s17 + $0x58] sm:$0xff]  ;;  %v2103_v27 = vld [vmem:[%s2014_s17 + $0x60] sm:$0xff] }
  0xf1   : > { %v1502_v29 = vpop.f32.mrb[6].mxu0  ;;  %1724 = vmatprep.subr.bf16.mxu0 %v1723_v28 }
  0xf2   : > { %v505_v30 = vpop.f32.mrb[7].mxu0  ;;  %1726 = vmatpush3.bf16.msra.mxu0 %v1723_v28  ;;  %v1771_v28 = vpack.c.bf16 %v735_v25, %v734_v24 }
  0xf3   : > { %v1727_v31 = vpack.c.bf16 %v1502_v29, %v505_v30  ;;  %v2108_v29 = vld [vmem:[%s2014_s17 + $0x68] sm:$0xff]  ;;  %v2111_v30 = vld [vmem:[%s2014_s17 + $0x70] sm:$0xff] }
  0xf5   : > { %v1505_v32 = vpop.f32.mrb[8].mxu0  ;;  %1728 = vmatprep.subr.bf16.mxu0 %v1727_v31 }
  0xf6   : > { %v515_v33 = vpop.f32.mrb[9].mxu0  ;;  %1730 = vmatpush3.bf16.msra.mxu0 %v1727_v31  ;;  %v2116_v31 = vld [vmem:[%s2014_s17 + $0x78] sm:$0xff] }
  0xf7   : > { %v1731_v34 = vpack.c.bf16 %v1505_v32, %v515_v33  ;;  %v736_v32 = vld [vmem:[%s2216_s4 + $0x70] sm:$0xff]  ;;  %v737_v33 = vld [vmem:[%s2216_s4 + $0x78] sm:$0xff] }
  0xf9   : > { %v1508_v35 = vpop.f32.mrb[10].mxu0  ;;  %1732 = vmatprep.subr.bf16.mxu0 %v1731_v34 }
  0xfa   : > { %v525_v36 = vpop.f32.mrb[11].mxu0  ;;  %1734 = vmatpush3.bf16.msra.mxu0 %v1731_v34  ;;  %v1775_v34 = vpack.c.bf16 %v737_v33, %v736_v32 }
  0xfb   : > { %v1735_v37 = vpack.c.bf16 %v1508_v35, %v525_v36  ;;  %v1331_v35 = vld [vmem:[%s2215_s3] ss:$0 sm:$0xff] }
  0xfd   : > { %v1511_v38 = vpop.f32.mrb[12].mxu0  ;;  %1736 = vmatprep.subr.bf16.mxu0 %v1735_v37 }
  0xfe   : > { %v535_v39 = vpop.f32.mrb[13].mxu0  ;;  %1738 = vmatpush3.bf16.msra.mxu0 %v1735_v37 }
  0xff   : > { %v1739_v40 = vpack.c.bf16 %v1511_v38, %v535_v39 }
 0x101   : > { %v1514_v43 = vpop.f32.mrb[14].mxu0  ;;  %1740 = vmatprep.subr.bf16.mxu0 %v1739_v40 }
 0x102   : > { %v545_v44 = vpop.f32.mrb[15].mxu0  ;;  %1742 = vmatpush3.bf16.msra.mxu0 %v1739_v40 }
 0x103   : > { %v1743_v45 = vpack.c.bf16 %v1514_v43, %v545_v44 }
 0x105   : > { %1744 = vmatprep.subr.bf16.mxu0 %v1743_v45 }
 0x106   : > { %1746 = vmatpush3.bf16.msra.mxu0 %v1743_v45 }
 0x107   : > { %1748 = vmatprep.subr.bf16.mxu0 %v1747_v46 }
 0x109   : > { %1548 = vmatmul.mubr.f32.vlgmr.msra.gmra.mrb[16].mxu0 %v2030_v49 }
 0x10a   : > { %1550 = vmatprep.mubr.f32.mxu0 %v2033_v50  ;;  %1750 = vmatpush3.bf16.msra.mxu0 %v1747_v46 }
 0x10b   : > { %1752 = vmatprep.subr.bf16.mxu0 %v1751_v51 }
 0x10d   : > { %1551 = vmatmul.mubr.f32.gmra.mrb[18].mxu0 %v2044_v54 }
 0x10e   : > { %1553 = vmatprep.mubr.f32.mxu0 %v2047_v55  ;;  %1754 = vmatpush3.bf16.msra.mxu0 %v1751_v51 }
 0x10f   : > { %1756 = vmatprep.subr.bf16.mxu0 %v1755_v56 }
 0x111   : > { %1554 = vmatmul.mubr.f32.gmra.mrb[20].mxu0 %v2058_v59 }
 0x112   : > { %1556 = vmatprep.mubr.f32.mxu0 %v2061_v60  ;;  %1758 = vmatpush3.bf16.msra.mxu0 %v1755_v56 }
 0x113   : > { %1760 = vmatprep.subr.bf16.mxu0 %v1759_v61 }
 0x115   : > { %1557 = vmatmul.mubr.f32.gmra.mrb[22].mxu0 %v2072_v0 }
 0x116   : > { %1559 = vmatprep.mubr.f32.mxu0 %v2075_v1  ;;  %1762 = vmatpush3.bf16.msra.mxu0 %v1759_v61 }
 0x117   : > { %1764 = vmatprep.subr.bf16.mxu0 %v1763_v2 }
 0x119   : > { %1560 = vmatmul.mubr.f32.gmra.mrb[24].mxu0 %v2086_v21 }
 0x11a   : > { %1562 = vmatprep.mubr.f32.mxu0 %v2089_v22  ;;  %1766 = vmatpush3.bf16.msra.mxu0 %v1763_v2 }
 0x11b   : > { %1768 = vmatprep.subr.bf16.mxu0 %v1767_v23 }
 0x11d   : > { %1563 = vmatmul.mubr.f32.gmra.mrb[26].mxu0 %v2100_v26 }
 0x11e   : > { %1565 = vmatprep.mubr.f32.mxu0 %v2103_v27  ;;  %1770 = vmatpush3.bf16.msra.mxu0 %v1767_v23 }
 0x11f   : > { %1772 = vmatprep.subr.bf16.mxu0 %v1771_v28 }
 0x121   : > { %1566 = vmatmul.mubr.f32.gmra.mrb[28].mxu0 %v2108_v29 }
 0x122   : > { %1568 = vmatprep.mubr.f32.mxu0 %v2111_v30  ;;  %1774 = vmatpush3.bf16.msra.mxu0 %v1771_v28 }
 0x123   : > { %1776 = vmatprep.subr.bf16.mxu0 %v1775_v34 }
 0x125   : > { %1569 = vmatmul.mubr.f32.gmra.mrb[30].mxu0 %v2116_v31 }
 0x126   : > { %1778 = vmatpush3.bf16.msra.mxu0 %v1775_v34 }
 0x1dc   : > { %v1549_v36 = vpop.f32.mrb[16].mxu0 }
 0x1dd   : > { %v633_v37 = vadd.f32 %v1549_v36, %v1331_v35  ;;  %v627_v38 = vpop.f32.mrb[17].mxu0 }
 0x1de   : > { %v628_v39 = vadd.f32 %v1331_v35, %v627_v38 }
 0x1df   : > { %v707_v42 = vmax.f32 %v633_v37, 0.0 }
 0x1e0   : > { %v706_v40 = vmax.f32 %v628_v39, 0.0  ;;  %v1552_v41 = vpop.f32.mrb[18].mxu0 }
 0x1e1   : > { %v643_v43 = vadd.f32 %v1552_v41, %v1331_v35  ;;  %v637_v44 = vpop.f32.mrb[19].mxu0 }
 0x1e2   : > { %v638_v45 = vadd.f32 %v1331_v35, %v637_v44  ;;  %1603 = vmatprep.mubr.f32.mxu0 %v706_v40 }
 0x1e3   : > { %1604 = vmatmul.mubr.f32.vlgmr.msra.gmra.mrb[32].mxu0 %v707_v42  ;;  %v709_v48 = vmax.f32 %v643_v43, 0.0 }
 0x1e4   : > { %v708_v46 = vmax.f32 %v638_v45, 0.0  ;;  %v1555_v47 = vpop.f32.mrb[20].mxu0 }
 0x1e5   : > { %v653_v51 = vadd.f32 %v1555_v47, %v1331_v35  ;;  %v647_v52 = vpop.f32.mrb[21].mxu0 }
 0x1e6   : > { %v648_v53 = vadd.f32 %v1331_v35, %v647_v52  ;;  %1606 = vmatprep.mubr.f32.mxu0 %v708_v46 }
 0x1e7   : > { %1607 = vmatmul.mubr.f32.gmra.mrb[34].mxu0 %v709_v48  ;;  %v711_v58 = vmax.f32 %v653_v51, 0.0 }
 0x1e8   : > { %v710_v56 = vmax.f32 %v648_v53, 0.0  ;;  %v1558_v57 = vpop.f32.mrb[22].mxu0 }
 0x1e9   : > { %v663_v61 = vadd.f32 %v1558_v57, %v1331_v35  ;;  %v657_v62 = vpop.f32.mrb[23].mxu0 }
 0x1ea   : > { %v658_v63 = vadd.f32 %v1331_v35, %v657_v62  ;;  %1609 = vmatprep.mubr.f32.mxu0 %v710_v56 }
 0x1eb   : > { %1610 = vmatmul.mubr.f32.gmra.mrb[36].mxu0 %v711_v58  ;;  %v713_v20 = vmax.f32 %v663_v61, 0.0 }
 0x1ec   : > { %v712_v2 = vmax.f32 %v658_v63, 0.0  ;;  %v1561_v19 = vpop.f32.mrb[24].mxu0 }
 0x1ed   : > { %v673_v23 = vadd.f32 %v1561_v19, %v1331_v35  ;;  %v667_v24 = vpop.f32.mrb[25].mxu0 }
 0x1ee   : > { %v668_v25 = vadd.f32 %v1331_v35, %v667_v24  ;;  %1612 = vmatprep.mubr.f32.mxu0 %v712_v2 }
 0x1ef   : > { %1613 = vmatmul.mubr.f32.gmra.mrb[38].mxu0 %v713_v20  ;;  %v715_v33 = vmax.f32 %v673_v23, 0.0 }
 0x1f0   : > { %v714_v28 = vmax.f32 %v668_v25, 0.0  ;;  %v1564_v32 = vpop.f32.mrb[26].mxu0 }
 0x1f1   : > { %v683_v34 = vadd.f32 %v1564_v32, %v1331_v35  ;;  %v677_v36 = vpop.f32.mrb[27].mxu0 }
 0x1f2   : > { %v678_v37 = vadd.f32 %v1331_v35, %v677_v36  ;;  %1615 = vmatprep.mubr.f32.mxu0 %v714_v28 }
 0x1f3   : > { %1616 = vmatmul.mubr.f32.gmra.mrb[40].mxu0 %v715_v33  ;;  %v717_v40 = vmax.f32 %v683_v34, 0.0 }
 0x1f4   : > { %v716_v38 = vmax.f32 %v678_v37, 0.0  ;;  %v1567_v39 = vpop.f32.mrb[28].mxu0 }
 0x1f5   : > { %v693_v41 = vadd.f32 %v1567_v39, %v1331_v35  ;;  %v687_v42 = vpop.f32.mrb[29].mxu0 }
 0x1f6   : > { %v688_v43 = vadd.f32 %v1331_v35, %v687_v42  ;;  %1618 = vmatprep.mubr.f32.mxu0 %v716_v38 }
 0x1f7   : > { %1619 = vmatmul.mubr.f32.gmra.mrb[42].mxu0 %v717_v40  ;;  %v719_v46 = vmax.f32 %v693_v41, 0.0  ;;  %v1035_v40 = vld [vmem:[%s2218_s6] sm:$0xff]  ;;  %v1036_v41 = vld [vmem:[%s2218_s6 + $0x8] sm:$0xff] }
 0x1f8   : > { %v718_v44 = vmax.f32 %v688_v43, 0.0  ;;  %v1570_v45 = vpop.f32.mrb[30].mxu0 }
 0x1f9   : > { %v703_v47 = vadd.f32 %v1570_v45, %v1331_v35  ;;  %v697_v48 = vpop.f32.mrb[31].mxu0  ;;  %v1811_v45 = vpack.c.bf16 %v1036_v41, %v1035_v40 }
 0x1fa   : > { %v698_v51 = vadd.f32 %v1331_v35, %v697_v48  ;;  %1621 = vmatprep.mubr.f32.mxu0 %v718_v44 }
 0x1fb   : > { %1622 = vmatmul.mubr.f32.gmra.mrb[44].mxu0 %v719_v46  ;;  %v721_v53 = vmax.f32 %v703_v47, 0.0 }
 0x1fc   : > { %v720_v52 = vmax.f32 %v698_v51, 0.0 }
 0x1fe   : > { %1624 = vmatprep.mubr.f32.mxu0 %v720_v52 }
 0x1ff   : > { %1625 = vmatmul.mubr.f32.gmra.mrb[46].mxu0 %v721_v53 }
 0x2b6   : > { %v1605_v56 = vpop.f32.mrb[32].mxu0 }
 0x2b7   : > { %v804_v57 = vpop.f32.mrb[33].mxu0 }
 0x2b8   : > { %v1779_v58 = vpack.c.bf16 %v1605_v56, %v804_v57 }
 0x2ba   : > { %v1608_v61 = vpop.f32.mrb[34].mxu0  ;;  %1780 = vmatprep.subr.bf16.mxu1 %v1779_v58 }
 0x2bb   : > { %v814_v62 = vpop.f32.mrb[35].mxu0  ;;  %1782 = vmatpush3.bf16.msra.mxu1 %v1779_v58 }
 0x2bc   : > { %v1783_v63 = vpack.c.bf16 %v1608_v61, %v814_v62 }
 0x2be   : > { %v1611_v2 = vpop.f32.mrb[36].mxu0  ;;  %1784 = vmatprep.subr.bf16.mxu1 %v1783_v63 }
 0x2bf   : > { %v824_v19 = vpop.f32.mrb[37].mxu0  ;;  %1786 = vmatpush3.bf16.msra.mxu1 %v1783_v63 }
 0x2c0   : > { %v1787_v20 = vpack.c.bf16 %v1611_v2, %v824_v19 }
 0x2c2   : > { %v1614_v35 = vpop.f32.mrb[38].mxu0  ;;  %1788 = vmatprep.subr.bf16.mxu1 %v1787_v20 }
 0x2c3   : > { %v834_v23 = vpop.f32.mrb[39].mxu0  ;;  %1790 = vmatpush3.bf16.msra.mxu1 %v1787_v20 }
 0x2c4   : > { %v1791_v24 = vpack.c.bf16 %v1614_v35, %v834_v23 }
 0x2c6   : > { %v1617_v25 = vpop.f32.mrb[40].mxu0  ;;  %1792 = vmatprep.subr.bf16.mxu1 %v1791_v24 }
 0x2c7   : > { %v844_v28 = vpop.f32.mrb[41].mxu0  ;;  %1794 = vmatpush3.bf16.msra.mxu1 %v1791_v24 }
 0x2c8   : > { %v1795_v32 = vpack.c.bf16 %v1617_v25, %v844_v28 }
 0x2ca   : > { %v1620_v33 = vpop.f32.mrb[42].mxu0  ;;  %1796 = vmatprep.subr.bf16.mxu1 %v1795_v32 }
 0x2cb   : > { %v854_v34 = vpop.f32.mrb[43].mxu0  ;;  %1798 = vmatpush3.bf16.msra.mxu1 %v1795_v32 }
 0x2cc   : > { %v1799_v36 = vpack.c.bf16 %v1620_v33, %v854_v34 }
 0x2ce   : > { %v1623_v37 = vpop.f32.mrb[44].mxu0  ;;  %1800 = vmatprep.subr.bf16.mxu1 %v1799_v36 }
 0x2cf   : > { %v864_v38 = vpop.f32.mrb[45].mxu0  ;;  %1802 = vmatpush3.bf16.msra.mxu1 %v1799_v36 }
 0x2d0   : > { %v1803_v39 = vpack.c.bf16 %v1623_v37, %v864_v38 }
 0x2d2   : > { %v1626_v42 = vpop.f32.mrb[46].mxu0  ;;  %1804 = vmatprep.subr.bf16.mxu1 %v1803_v39 }
 0x2d3   : > { %v874_v43 = vpop.f32.mrb[47].mxu0  ;;  %1806 = vmatpush3.bf16.msra.mxu1 %v1803_v39 }
 0x2d4   : > { %v1807_v44 = vpack.c.bf16 %v1626_v42, %v874_v43 }
 0x2d6   : > { %1808 = vmatprep.subr.bf16.mxu1 %v1807_v44 }
 0x2d7   : > { %1810 = vmatpush3.bf16.msra.mxu1 %v1807_v44 }
 0x2d8   : > { %1812 = vmatprep.subr.bf16.mxu1 %v1811_v45 }
 0x2da   : > { %1660 = vmatmul.mubr.f32.vlgmr.msra.gmra.mrb[0].mxu1 %v2030_v49 }
 0x2db   : > { %1814 = vmatpush3.bf16.msra.mxu1 %v1811_v45  ;;  %1662 = vmatprep.mubr.f32.mxu1 %v2033_v50 }
 0x2de   : > { %1663 = vmatmul.mubr.f32.gmra.mrb[2].mxu1 %v2044_v54 }
 0x2df   : > { %1665 = vmatprep.mubr.f32.mxu1 %v2047_v55 }
 0x2e2   : > { %1666 = vmatmul.mubr.f32.gmra.mrb[4].mxu1 %v2058_v59 }
 0x2e3   : > { %1668 = vmatprep.mubr.f32.mxu1 %v2061_v60 }
 0x2e6   : > { %1669 = vmatmul.mubr.f32.gmra.mrb[6].mxu1 %v2072_v0 }
 0x2e7   : > { %1671 = vmatprep.mubr.f32.mxu1 %v2075_v1 }
 0x2ea   : > { %1672 = vmatmul.mubr.f32.gmra.mrb[8].mxu1 %v2086_v21 }
 0x2eb   : > { %1674 = vmatprep.mubr.f32.mxu1 %v2089_v22 }
 0x2ee   : > { %1675 = vmatmul.mubr.f32.gmra.mrb[10].mxu1 %v2100_v26 }
 0x2ef   : > { %1677 = vmatprep.mubr.f32.mxu1 %v2103_v27 }
 0x2f2   : > { %1678 = vmatmul.mubr.f32.gmra.mrb[12].mxu1 %v2108_v29 }
 0x2f3   : > { %1680 = vmatprep.mubr.f32.mxu1 %v2111_v30 }
 0x2f6   : > { %1681 = vmatmul.mubr.f32.gmra.mrb[14].mxu1 %v2116_v31 }
 0x2f7   : > { %1687 = vmatprep.mubr.msk.f32.mxu1 %vm360_vm0, %v1931_v3  ;;  %v1332_v3 = vld [vmem:[%s2217_s5] ss:$0 sm:$0xff] }
 0x2fa   : > { %1688 = vmatmul.mubr.msk.f32.vlgmr.msra.gmra.mrb[0].mxu1 %vm360_vm0, %v1934_v4 }
 0x2fb   : > { %1690 = vmatprep.mubr.msk.f32.mxu1 %vm360_vm0, %v1937_v5  ;;  %v1349_v5 = vld [vmem:[%s2219_s7] ss:$0 sm:$0xff] }
 0x2fe   : > { %1691 = vmatmul.mubr.msk.f32.gmra.mrb[2].mxu1 %vm360_vm0, %v1946_v6 }
 0x2ff   : > { %1693 = vmatprep.mubr.msk.f32.mxu1 %vm360_vm0, %v1949_v7 }
 0x302   : > { %1694 = vmatmul.mubr.msk.f32.gmra.mrb[4].mxu1 %vm360_vm0, %v1956_v8 }
 0x303   : > { %1696 = vmatprep.mubr.msk.f32.mxu1 %vm360_vm0, %v1959_v9 }
 0x306   : > { %1697 = vmatmul.mubr.msk.f32.gmra.mrb[6].mxu1 %vm360_vm0, %v1966_v10 }
 0x307   : > { %1699 = vmatprep.mubr.msk.f32.mxu1 %vm360_vm0, %v1969_v11 }
 0x30a   : > { %1700 = vmatmul.mubr.msk.f32.gmra.mrb[8].mxu1 %vm360_vm0, %v1976_v12 }
 0x30b   : > { %1702 = vmatprep.mubr.msk.f32.mxu1 %vm360_vm0, %v1979_v13 }
 0x30e   : > { %1703 = vmatmul.mubr.msk.f32.gmra.mrb[10].mxu1 %vm360_vm0, %v1986_v14 }
 0x30f   : > { %1705 = vmatprep.mubr.msk.f32.mxu1 %vm360_vm0, %v1989_v15 }
 0x312   : > { %1706 = vmatmul.mubr.msk.f32.gmra.mrb[12].mxu1 %vm360_vm0, %v1996_v16 }
 0x313   : > { %1708 = vmatprep.mubr.msk.f32.mxu1 %vm360_vm0, %v1999_v17 }
 0x316   : > { %1709 = vmatmul.mubr.msk.f32.gmra.mrb[14].mxu1 %vm360_vm0, %v2006_v18 }
 0x3cd   : > { %v1689_v4 = vpop.f32.mrb[0].mxu1 }
 0x3ce   : > { %v1815_v6 = vadd.f32 %v1689_v4, %v1332_v3  ;;  %v1103_v7 = vpop.f32.mrb[1].mxu1 }
 0x3cf   : > { %v1816_v8 = vadd.f32 %v1332_v3, %v1103_v7 }
 0x3d0   : > { %v1206_v9 = vadd.f32 %v1815_v6, %v1349_v5 }
 0x3d1   : > { %v1205_v10 = vadd.f32 %v1816_v8, %v1349_v5  ;;  %v1692_v11 = vpop.f32.mrb[2].mxu1 }
 0x3d2   : > { %1222 = vst [vmem:[%s2191_s23 + $0x8] sm:$0xff] %v1206_v9  ;;  %v1817_v12 = vadd.f32 %v1692_v11, %v1332_v3  ;;  %v1113_v13 = vpop.f32.mrb[3].mxu1 }
 0x3d3   : > { %1221 = vst [vmem:[%s2191_s23] sm:$0xff] %v1205_v10  ;;  %v1818_v14 = vadd.f32 %v1332_v3, %v1113_v13 }
 0x3d4   : > { %v1208_v15 = vadd.f32 %v1817_v12, %v1349_v5 }
 0x3d5   : > { %v1207_v16 = vadd.f32 %v1818_v14, %v1349_v5  ;;  %v1695_v17 = vpop.f32.mrb[4].mxu1 }
 0x3d6   : > { %1224 = vst [vmem:[%s2191_s23 + $0x18] sm:$0xff] %v1208_v15  ;;  %v1819_v18 = vadd.f32 %v1695_v17, %v1332_v3  ;;  %v1123_v49 = vpop.f32.mrb[5].mxu1 }
 0x3d7   : > { %1223 = vst [vmem:[%s2191_s23 + $0x10] sm:$0xff] %v1207_v16  ;;  %v1820_v50 = vadd.f32 %v1332_v3, %v1123_v49 }
 0x3d8   : > { %v1210_v54 = vadd.f32 %v1819_v18, %v1349_v5 }
 0x3d9   : > { %v1209_v55 = vadd.f32 %v1820_v50, %v1349_v5  ;;  %v1698_v59 = vpop.f32.mrb[6].mxu1 }
 0x3da   : > { %1226 = vst [vmem:[%s2191_s23 + $0x28] sm:$0xff] %v1210_v54  ;;  %v1821_v60 = vadd.f32 %v1698_v59, %v1332_v3  ;;  %v1133_v0 = vpop.f32.mrb[7].mxu1 }
 0x3db   : > { %1225 = vst [vmem:[%s2191_s23 + $0x20] sm:$0xff] %v1209_v55  ;;  %v1822_v1 = vadd.f32 %v1332_v3, %v1133_v0 }
 0x3dc   : > { %v1212_v21 = vadd.f32 %v1821_v60, %v1349_v5 }
 0x3dd   : > { %v1211_v22 = vadd.f32 %v1822_v1, %v1349_v5  ;;  %v1701_v26 = vpop.f32.mrb[8].mxu1 }
 0x3de   : > { %1228 = vst [vmem:[%s2191_s23 + $0x38] sm:$0xff] %v1212_v21  ;;  %v1823_v27 = vadd.f32 %v1701_v26, %v1332_v3  ;;  %v1143_v29 = vpop.f32.mrb[9].mxu1 }
 0x3df   : > { %1227 = vst [vmem:[%s2191_s23 + $0x30] sm:$0xff] %v1211_v22  ;;  %v1824_v30 = vadd.f32 %v1332_v3, %v1143_v29 }
 0x3e0   : > { %v1214_v31 = vadd.f32 %v1823_v27, %v1349_v5 }
 0x3e1   : > { %v1213_v46 = vadd.f32 %v1824_v30, %v1349_v5  ;;  %v1704_v47 = vpop.f32.mrb[10].mxu1 }
 0x3e2   : > { %1230 = vst [vmem:[%s2191_s23 + $0x48] sm:$0xff] %v1214_v31  ;;  %v1825_v48 = vadd.f32 %v1704_v47, %v1332_v3  ;;  %v1153_v51 = vpop.f32.mrb[11].mxu1 }
 0x3e3   : > { %1229 = vst [vmem:[%s2191_s23 + $0x40] sm:$0xff] %v1213_v46  ;;  %v1826_v52 = vadd.f32 %v1332_v3, %v1153_v51 }
 0x3e4   : > { %v1216_v53 = vadd.f32 %v1825_v48, %v1349_v5 }
 0x3e5   : > { %v1215_v56 = vadd.f32 %v1826_v52, %v1349_v5  ;;  %v1707_v57 = vpop.f32.mrb[12].mxu1 }
 0x3e6   : > { %1232 = vst [vmem:[%s2191_s23 + $0x58] sm:$0xff] %v1216_v53  ;;  %v1827_v58 = vadd.f32 %v1707_v57, %v1332_v3  ;;  %v1163_v61 = vpop.f32.mrb[13].mxu1 }
 0x3e7   : > { %1231 = vst [vmem:[%s2191_s23 + $0x50] sm:$0xff] %v1215_v56  ;;  %v1828_v62 = vadd.f32 %v1332_v3, %v1163_v61 }
 0x3e8   : > { %v1218_v63 = vadd.f32 %v1827_v58, %v1349_v5 }
 0x3e9   : > { %v1217_v2 = vadd.f32 %v1828_v62, %v1349_v5  ;;  %v1710_v19 = vpop.f32.mrb[14].mxu1 }
 0x3ea   : > { %1234 = vst [vmem:[%s2191_s23 + $0x68] sm:$0xff] %v1218_v63  ;;  %v1829_v20 = vadd.f32 %v1710_v19, %v1332_v3  ;;  %v1173_v35 = vpop.f32.mrb[15].mxu1 }
 0x3eb   : > { %1233 = vst [vmem:[%s2191_s23 + $0x60] sm:$0xff] %v1217_v2  ;;  %v1830_v23 = vadd.f32 %v1332_v3, %v1173_v35 }
 0x3ec   : > { %v1220_v24 = vadd.f32 %v1829_v20, %v1349_v5 }
 0x3ed   : > { %v1219_v25 = vadd.f32 %v1830_v23, %v1349_v5 }
 0x3ee   : > { %1236 = vst [vmem:[%s2191_s23 + $0x78] sm:$0xff] %v1220_v24 }
 0x3ef   : > { %1235 = vst [vmem:[%s2191_s23 + $0x70] sm:$0xff] %v1219_v25 }
 0x3f0 PF: > { %s18_s27 = sadd.s32 1, %s1861_s27  }
 0x3f1   : > { %p15_p4 = scmp.ge.s32.totalorder %s18_s27, 5  }
 0x3f3   :  { %17 = sbr.rel (!%p15_p4) target bundleno = 1 (0x1), region = 85 }

</bundles_post_ra>
